<compile_context>
chip_gen: v7x
topology: tpu7x:2x2x1
jax: 0.10.0
libtpu: 0.0.40
codegen_flags: <defaults>
</compile_context>

<pallas_src>
import numpy as np
import jax
import jax.numpy as jnp
from jax.experimental import pallas as pl
from jax.experimental.pallas import tpu as pltpu

_EPS = 1e-5


# ----------------------------------------------------------------------------
# Glue: 1-D bilinear (align_corners=True) interpolation matrices.
# ----------------------------------------------------------------------------
def _interp_matrix_1d(out_size, in_size):
    """1-D bilinear interpolation matrix (align_corners=True), shape (out, in)."""
    r = np.zeros((out_size, in_size), dtype=np.float32)
    for i in range(out_size):
        s = 0.0 if out_size == 1 else i * (in_size - 1) / (out_size - 1)
        i0 = min(int(np.floor(s)), in_size - 1)
        i1 = min(i0 + 1, in_size - 1)
        w1 = float(s - i0)
        r[i, i0] += 1.0 - w1
        r[i, i1] += w1
    return r


# ----------------------------------------------------------------------------
# Single fused kernel: all levels (ReLU -> conv1x1 -> separable upsample),
# sum, and eval-mode BatchNorm.
# ----------------------------------------------------------------------------
def _make_fused_kernel(level_shapes, depth, out_h, out_w):
    """level_shapes: list of (C, Hi, Wi) for the active levels."""
    n_levels = len(level_shapes)
    hw = out_h * out_w

    def kernel(*refs):
        # refs = [x_0, w_0, rh_0, rwT_0, ..., x_{L-1}, ..., scale, bias, o_ref]
        o_ref = refs[-1]
        scale_ref = refs[4 * n_levels]
        bias_ref = refs[4 * n_levels + 1]

        acc = jnp.zeros((depth, hw), jnp.float32)
        for l in range(n_levels):
            x_ref, w_ref, rh_ref, rwt_ref = refs[4 * l:4 * l + 4]
            c, hi, wi = level_shapes[l]

            # ReLU in f32, cast to bf16 only for the MXU matmul inputs.
            z = jnp.maximum(x_ref[0], 0.0).astype(jnp.bfloat16)          # (C, Hi*Wi)
            # 1x1 conv (no bias): (D, C) @ (C, Hi*Wi) -> (D, Hi*Wi), f32 accum.
            y = jnp.dot(w_ref[...], z,
                        preferred_element_type=jnp.float32)              # (D, Hi*Wi)
            y3 = y.reshape(depth, hi, wi)                                # (D, Hi, Wi)

            # Separable bilinear upsample (align_corners=True):
            # width:  (D, Hi, Wi) @ (D, Wi, W) -> (D, Hi, W)
            rwb = jnp.broadcast_to(rwt_ref[...], (depth, wi, out_w))
            t = jax.lax.dot_general(y3, rwb, (((2,), (1,)), ((0,), (0,))),
                                    preferred_element_type=jnp.float32)
            # height: (D, H, Hi) @ (D, Hi, W) -> (D, H, W)
            rhb = jnp.broadcast_to(rh_ref[...], (depth, out_h, hi))
            u = jax.lax.dot_general(rhb, t, (((2,), (1,)), ((0,), (0,))),
                                    preferred_element_type=jnp.float32)

            acc = acc + u.reshape(depth, hw)

        # Eval-mode BatchNorm folded into one FMA; lane-dense (D, H*W) store.
        o_ref[0] = acc * scale_ref[...] + bias_ref[...]

    return kernel


def decoder_forward_pallas(levels, bn_scale, bn_bias, depth, out_h, out_w):
    """levels: list of (x_nchw_f32, w_f32 of shape (D, C)). Returns (N, D, H, W)."""
    n = levels[0][0].shape[0]
    hw = out_h * out_w

    args, in_specs, shapes = [], [], []
    for x, w in levels:
        _, c, hi, wi = x.shape
        shapes.append((c, hi, wi))
        rh = jnp.asarray(_interp_matrix_1d(out_h, hi))        # (H, Hi)  f32
        rwt = jnp.asarray(_interp_matrix_1d(out_w, wi).T)     # (Wi, W)  f32
        args += [x.reshape(n, c, hi * wi), w.astype(jnp.bfloat16), rh, rwt]
        in_specs += [
            pl.BlockSpec((1, c, hi * wi), lambda b: (b, 0, 0)),
            pl.BlockSpec((depth, c), lambda b: (0, 0)),
            pl.BlockSpec((out_h, hi), lambda b: (0, 0)),
            pl.BlockSpec((wi, out_w), lambda b: (0, 0)),
        ]
    args += [bn_scale, bn_bias]
    in_specs += [pl.BlockSpec((depth, 1), lambda b: (0, 0)),
                 pl.BlockSpec((depth, 1), lambda b: (0, 0))]

    out = pl.pallas_call(
        _make_fused_kernel(shapes, depth, out_h, out_w),
        out_shape=jax.ShapeDtypeStruct((n, depth, hw), jnp.float32),
        grid=(n,),
        in_specs=in_specs,
        out_specs=pl.BlockSpec((1, depth, hw), lambda b: (b, 0, 0)),
        compiler_params=pltpu.CompilerParams(dimension_semantics=("parallel",)),
    )(*args)
    # Free layout plumbing back to NCHW.
    return out.reshape(n, depth, out_h, out_w)


# ----------------------------------------------------------------------------
# Decoder wrapper (parameter setup = glue; compute = single Pallas kernel).
# ----------------------------------------------------------------------------
class DecoderPallas:
    """JAX/Pallas port of Decoder (eval mode; activation assumed to be ReLU)."""

    def __init__(self, depth, down_channels, up_channels, mask, key):
        self.depth = depth
        self.mask = np.asarray(mask, dtype=bool)
        self.none = not np.any(self.mask)
        if self.none:
            return
        n_levels = len(down_channels)
        keys = jax.random.split(key, 2 * n_levels + 4)
        # 1x1 conv weights stored in PyTorch layout (D, C), f32.
        self.down_w, self.up_w = [], []
        for i, (c, m) in enumerate(zip(down_channels, self.mask[:, 0])):
            self.down_w.append(
                jax.random.normal(keys[i], (depth, c), jnp.float32) / np.sqrt(c)
                if m else None)
        for i, (c, m) in enumerate(zip(up_channels, self.mask[:, 1])):
            self.up_w.append(
                jax.random.normal(keys[n_levels + i], (depth, c), jnp.float32) / np.sqrt(c)
                if m else None)
        # BatchNorm2d eval-mode parameters / running stats, shape (depth,).
        self.gamma = 1.0 + 0.1 * jax.random.normal(keys[-4], (depth,), jnp.float32)
        self.beta = 0.1 * jax.random.normal(keys[-3], (depth,), jnp.float32)
        self.run_mean = 0.1 * jax.random.normal(keys[-2], (depth,), jnp.float32)
        self.run_var = 0.5 + jnp.abs(jax.random.normal(keys[-1], (depth,), jnp.float32))
        # Fold eval-mode BN into a single scale/bias (hoisted out of the kernel).
        scale = self.gamma * jax.lax.rsqrt(self.run_var + _EPS)
        bias = self.beta - self.run_mean * scale
        self.bn_scale = scale.reshape(depth, 1)
        self.bn_bias = bias.reshape(depth, 1)

    def __call__(self, down_feature_maps, up_feature_maps):
        if self.none:
            return jnp.float32(0.0)
        n, _, h, w = down_feature_maps[-1].shape
        levels = []
        for dw, uw, df, uf in zip(self.down_w, self.up_w,
                                  down_feature_maps, up_feature_maps):
            if dw is not None:
                levels.append((df, dw))
            if uw is not None:
                levels.append((uf, uw))
        return decoder_forward_pallas(levels, self.bn_scale, self.bn_bias,
                                      self.depth, h, w)


# ----------------------------------------------------------------------------
# Pure-JAX f32 reference (same math, no Pallas) for a sanity check.
# ----------------------------------------------------------------------------
def decoder_reference(dec, down_feats, up_feats):
    n, _, h, w = down_feats[-1].shape
    acc = jnp.zeros((n, dec.depth, h, w), jnp.float32)

    def one(x, wt):
        y = jnp.einsum('nchw,dc->ndhw', jnp.maximum(x, 0.0), wt)
        rh = jnp.asarray(_interp_matrix_1d(h, x.shape[2]))
        rw = jnp.asarray(_interp_matrix_1d(w, x.shape[3]))
        return jnp.einsum('Ha,Wb,ndab->ndHW', rh, rw, y)

    for dw, uw, df, uf in zip(dec.down_w, dec.up_w, down_feats, up_feats):
        if dw is not None:
            acc = acc + one(df, dw)
        if uw is not None:
            acc = acc + one(uf, uw)
    inv = jax.lax.rsqrt(dec.run_var + _EPS)
    scale = (dec.gamma * inv)[None, :, None, None]
    return (acc - dec.run_mean[None, :, None, None]) * scale \
        + dec.beta[None, :, None, None]


if __name__ == "__main__":
    key = jax.random.PRNGKey(0)
    k_param, k_data = jax.random.split(key)

    depth = 8
    batch = 2
    down_channels = [4, 8, 16]
    up_channels = [16, 8, 4]
    down_sizes = [4, 8, 16]   # last down feature map sets target (h, w) = (16, 16)
    up_sizes = [16, 8, 4]
    mask = np.array([[1, 0], [0, 1], [1, 1]], dtype=bool)

    dkeys = jax.random.split(k_data, 2 * len(down_channels))
    down_feats = [
        jax.random.normal(dkeys[i], (batch, c, s, s), jnp.float32)
        for i, (c, s) in enumerate(zip(down_channels, down_sizes))
    ]
    up_feats = [
        jax.random.normal(dkeys[len(down_channels) + i], (batch, c, s, s), jnp.float32)
        for i, (c, s) in enumerate(zip(up_channels, up_sizes))
    ]

    dec = DecoderPallas(depth, down_channels, up_channels, mask, k_param)

    out = jax.block_until_ready(dec(down_feats, up_feats))
    ref = jax.block_until_ready(decoder_reference(dec, down_feats, up_feats))
    # Tolerance covers the bf16 cast of the 1x1-conv matmul inputs (f32 accumulation).
    np.testing.assert_allclose(np.asarray(out), np.asarray(ref), rtol=2e-2, atol=3e-2)

    print("KERNEL_OK")
</pallas_src>

<mosaic_0001>
module attributes {stable_mosaic.version = 11 : i64} {
  func.func @kernel(%arg0: i32, %arg1: memref<1x4x16xf32, #tpu.memory_space<vmem>>, %arg2: memref<8x4xbf16, #tpu.memory_space<vmem>>, %arg3: memref<16x4xf32, #tpu.memory_space<vmem>>, %arg4: memref<4x16xf32, #tpu.memory_space<vmem>>, %arg5: memref<1x8x64xf32, #tpu.memory_space<vmem>>, %arg6: memref<8x8xbf16, #tpu.memory_space<vmem>>, %arg7: memref<16x8xf32, #tpu.memory_space<vmem>>, %arg8: memref<8x16xf32, #tpu.memory_space<vmem>>, %arg9: memref<1x16x256xf32, #tpu.memory_space<vmem>>, %arg10: memref<8x16xbf16, #tpu.memory_space<vmem>>, %arg11: memref<16x16xf32, #tpu.memory_space<vmem>>, %arg12: memref<16x16xf32, #tpu.memory_space<vmem>>, %arg13: memref<1x4x16xf32, #tpu.memory_space<vmem>>, %arg14: memref<8x4xbf16, #tpu.memory_space<vmem>>, %arg15: memref<16x4xf32, #tpu.memory_space<vmem>>, %arg16: memref<4x16xf32, #tpu.memory_space<vmem>>, %arg17: memref<8x1xf32, #tpu.memory_space<vmem>>, %arg18: memref<8x1xf32, #tpu.memory_space<vmem>>, %arg19: memref<1x8x256xf32, #tpu.memory_space<vmem>>) attributes {dimension_semantics = [#tpu.dimension_semantics<parallel>], iteration_bounds = array<i64: 2>, scalar_prefetch = 0 : i64, scratch_operands = 0 : i64, tpu.core_type = #tpu.core_type<tc>, window_params = [{transform_indices = @transform_0, window_bounds = array<i64: 1, 4, 16>}, {pipeline_mode = #tpu.pipeline_mode<synchronous>, transform_indices = @transform_1, window_bounds = array<i64: 8, 4>}, {pipeline_mode = #tpu.pipeline_mode<synchronous>, transform_indices = @transform_2, window_bounds = array<i64: 16, 4>}, {pipeline_mode = #tpu.pipeline_mode<synchronous>, transform_indices = @transform_3, window_bounds = array<i64: 4, 16>}, {transform_indices = @transform_4, window_bounds = array<i64: 1, 8, 64>}, {pipeline_mode = #tpu.pipeline_mode<synchronous>, transform_indices = @transform_5, window_bounds = array<i64: 8, 8>}, {pipeline_mode = #tpu.pipeline_mode<synchronous>, transform_indices = @transform_6, window_bounds = array<i64: 16, 8>}, {pipeline_mode = #tpu.pipeline_mode<synchronous>, transform_indices = @transform_7, window_bounds = array<i64: 8, 16>}, {transform_indices = @transform_8, window_bounds = array<i64: 1, 16, 256>}, {pipeline_mode = #tpu.pipeline_mode<synchronous>, transform_indices = @transform_9, window_bounds = array<i64: 8, 16>}, {pipeline_mode = #tpu.pipeline_mode<synchronous>, transform_indices = @transform_10, window_bounds = array<i64: 16, 16>}, {pipeline_mode = #tpu.pipeline_mode<synchronous>, transform_indices = @transform_11, window_bounds = array<i64: 16, 16>}, {transform_indices = @transform_12, window_bounds = array<i64: 1, 4, 16>}, {pipeline_mode = #tpu.pipeline_mode<synchronous>, transform_indices = @transform_13, window_bounds = array<i64: 8, 4>}, {pipeline_mode = #tpu.pipeline_mode<synchronous>, transform_indices = @transform_14, window_bounds = array<i64: 16, 4>}, {pipeline_mode = #tpu.pipeline_mode<synchronous>, transform_indices = @transform_15, window_bounds = array<i64: 4, 16>}, {pipeline_mode = #tpu.pipeline_mode<synchronous>, transform_indices = @transform_16, window_bounds = array<i64: 8, 1>}, {pipeline_mode = #tpu.pipeline_mode<synchronous>, transform_indices = @transform_17, window_bounds = array<i64: 8, 1>}, {transform_indices = @transform_18, window_bounds = array<i64: 1, 8, 256>}]} {
    %cst = arith.constant 0.000000e+00 : f32
    %0 = vector.broadcast %cst : f32 to vector<8x256xf32>
    %c0 = arith.constant 0 : index
    %c0_0 = arith.constant 0 : index
    %c0_1 = arith.constant 0 : index
    %1 = vector.load %arg1[%c0, %c0_0, %c0_1] : memref<1x4x16xf32, #tpu.memory_space<vmem>>, vector<1x4x16xf32>
    %2 = vector.shape_cast %1 : vector<1x4x16xf32> to vector<4x16xf32>
    %cst_2 = arith.constant 0.000000e+00 : f32
    %3 = vector.broadcast %cst_2 : f32 to vector<4x16xf32>
    %4 = arith.maximumf %2, %3 : vector<4x16xf32>
    %5 = arith.truncf %4 : vector<4x16xf32> to vector<4x16xbf16>
    %c0_3 = arith.constant 0 : index
    %c0_4 = arith.constant 0 : index
    %6 = vector.load %arg2[%c0_3, %c0_4] : memref<8x4xbf16, #tpu.memory_space<vmem>>, vector<8x4xbf16>
    %cst_5 = arith.constant dense<0.000000e+00> : vector<8x16xf32>
    %7 = tpu.matmul %6, %5, %cst_5 {dimension_numbers = #tpu.dot_dimension_numbers<[1], [0], [0], [1], [0, 0, 1, 1], [], []>} : vector<8x4xbf16>, vector<4x16xbf16>, vector<8x16xf32> -> vector<8x16xf32>
    %8 = vector.shape_cast %7 : vector<8x16xf32> to vector<8x4x4xf32>
    %c0_6 = arith.constant 0 : index
    %c0_7 = arith.constant 0 : index
    %9 = vector.load %arg4[%c0_6, %c0_7] : memref<4x16xf32, #tpu.memory_space<vmem>>, vector<4x16xf32>
    %10 = vector.shape_cast %9 : vector<4x16xf32> to vector<1x4x16xf32>
    %11 = vector.broadcast %10 : vector<1x4x16xf32> to vector<8x4x16xf32>
    %cst_8 = arith.constant dense<0.000000e+00> : vector<8x4x16xf32>
    %12 = tpu.matmul %8, %11, %cst_8 {dimension_numbers = #tpu.dot_dimension_numbers<[2], [1], [1], [2], [0, 0, 0, 1, 1, 2], [0], [0]>} : vector<8x4x4xf32>, vector<8x4x16xf32>, vector<8x4x16xf32> -> vector<8x4x16xf32>
    %c0_9 = arith.constant 0 : index
    %c0_10 = arith.constant 0 : index
    %13 = vector.load %arg3[%c0_9, %c0_10] : memref<16x4xf32, #tpu.memory_space<vmem>>, vector<16x4xf32>
    %14 = vector.shape_cast %13 : vector<16x4xf32> to vector<1x16x4xf32>
    %15 = vector.broadcast %14 : vector<1x16x4xf32> to vector<8x16x4xf32>
    %cst_11 = arith.constant dense<0.000000e+00> : vector<8x16x16xf32>
    %16 = tpu.matmul %15, %12, %cst_11 {dimension_numbers = #tpu.dot_dimension_numbers<[2], [1], [1], [2], [0, 0, 0, 1, 1, 2], [0], [0]>} : vector<8x16x4xf32>, vector<8x4x16xf32>, vector<8x16x16xf32> -> vector<8x16x16xf32>
    %17 = vector.shape_cast %16 : vector<8x16x16xf32> to vector<8x256xf32>
    %18 = arith.addf %0, %17 : vector<8x256xf32>
    %c0_12 = arith.constant 0 : index
    %c0_13 = arith.constant 0 : index
    %c0_14 = arith.constant 0 : index
    %19 = vector.load %arg5[%c0_12, %c0_13, %c0_14] : memref<1x8x64xf32, #tpu.memory_space<vmem>>, vector<1x8x64xf32>
    %20 = vector.shape_cast %19 : vector<1x8x64xf32> to vector<8x64xf32>
    %cst_15 = arith.constant 0.000000e+00 : f32
    %21 = vector.broadcast %cst_15 : f32 to vector<8x64xf32>
    %22 = arith.maximumf %20, %21 : vector<8x64xf32>
    %23 = arith.truncf %22 : vector<8x64xf32> to vector<8x64xbf16>
    %c0_16 = arith.constant 0 : index
    %c0_17 = arith.constant 0 : index
    %24 = vector.load %arg6[%c0_16, %c0_17] : memref<8x8xbf16, #tpu.memory_space<vmem>>, vector<8x8xbf16>
    %cst_18 = arith.constant dense<0.000000e+00> : vector<8x64xf32>
    %25 = tpu.matmul %24, %23, %cst_18 {dimension_numbers = #tpu.dot_dimension_numbers<[1], [0], [0], [1], [0, 0, 1, 1], [], []>} : vector<8x8xbf16>, vector<8x64xbf16>, vector<8x64xf32> -> vector<8x64xf32>
    %26 = vector.shape_cast %25 : vector<8x64xf32> to vector<8x8x8xf32>
    %c0_19 = arith.constant 0 : index
    %c0_20 = arith.constant 0 : index
    %27 = vector.load %arg8[%c0_19, %c0_20] : memref<8x16xf32, #tpu.memory_space<vmem>>, vector<8x16xf32>
    %28 = vector.shape_cast %27 : vector<8x16xf32> to vector<1x8x16xf32>
    %29 = vector.broadcast %28 : vector<1x8x16xf32> to vector<8x8x16xf32>
    %cst_21 = arith.constant dense<0.000000e+00> : vector<8x8x16xf32>
    %30 = tpu.matmul %26, %29, %cst_21 {dimension_numbers = #tpu.dot_dimension_numbers<[2], [1], [1], [2], [0, 0, 0, 1, 1, 2], [0], [0]>} : vector<8x8x8xf32>, vector<8x8x16xf32>, vector<8x8x16xf32> -> vector<8x8x16xf32>
    %c0_22 = arith.constant 0 : index
    %c0_23 = arith.constant 0 : index
    %31 = vector.load %arg7[%c0_22, %c0_23] : memref<16x8xf32, #tpu.memory_space<vmem>>, vector<16x8xf32>
    %32 = vector.shape_cast %31 : vector<16x8xf32> to vector<1x16x8xf32>
    %33 = vector.broadcast %32 : vector<1x16x8xf32> to vector<8x16x8xf32>
    %cst_24 = arith.constant dense<0.000000e+00> : vector<8x16x16xf32>
    %34 = tpu.matmul %33, %30, %cst_24 {dimension_numbers = #tpu.dot_dimension_numbers<[2], [1], [1], [2], [0, 0, 0, 1, 1, 2], [0], [0]>} : vector<8x16x8xf32>, vector<8x8x16xf32>, vector<8x16x16xf32> -> vector<8x16x16xf32>
    %35 = vector.shape_cast %34 : vector<8x16x16xf32> to vector<8x256xf32>
    %36 = arith.addf %18, %35 : vector<8x256xf32>
    %c0_25 = arith.constant 0 : index
    %c0_26 = arith.constant 0 : index
    %c0_27 = arith.constant 0 : index
    %37 = vector.load %arg9[%c0_25, %c0_26, %c0_27] : memref<1x16x256xf32, #tpu.memory_space<vmem>>, vector<1x16x256xf32>
    %38 = vector.shape_cast %37 : vector<1x16x256xf32> to vector<16x256xf32>
    %cst_28 = arith.constant 0.000000e+00 : f32
    %39 = vector.broadcast %cst_28 : f32 to vector<16x256xf32>
    %40 = arith.maximumf %38, %39 : vector<16x256xf32>
    %41 = arith.truncf %40 : vector<16x256xf32> to vector<16x256xbf16>
    %c0_29 = arith.constant 0 : index
    %c0_30 = arith.constant 0 : index
    %42 = vector.load %arg10[%c0_29, %c0_30] : memref<8x16xbf16, #tpu.memory_space<vmem>>, vector<8x16xbf16>
    %cst_31 = arith.constant dense<0.000000e+00> : vector<8x256xf32>
    %43 = tpu.matmul %42, %41, %cst_31 {dimension_numbers = #tpu.dot_dimension_numbers<[1], [0], [0], [1], [0, 0, 1, 1], [], []>} : vector<8x16xbf16>, vector<16x256xbf16>, vector<8x256xf32> -> vector<8x256xf32>
    %44 = vector.shape_cast %43 : vector<8x256xf32> to vector<8x16x16xf32>
    %c0_32 = arith.constant 0 : index
    %c0_33 = arith.constant 0 : index
    %45 = vector.load %arg12[%c0_32, %c0_33] : memref<16x16xf32, #tpu.memory_space<vmem>>, vector<16x16xf32>
    %46 = vector.shape_cast %45 : vector<16x16xf32> to vector<1x16x16xf32>
    %47 = vector.broadcast %46 : vector<1x16x16xf32> to vector<8x16x16xf32>
    %cst_34 = arith.constant dense<0.000000e+00> : vector<8x16x16xf32>
    %48 = tpu.matmul %44, %47, %cst_34 {dimension_numbers = #tpu.dot_dimension_numbers<[2], [1], [1], [2], [0, 0, 0, 1, 1, 2], [0], [0]>} : vector<8x16x16xf32>, vector<8x16x16xf32>, vector<8x16x16xf32> -> vector<8x16x16xf32>
    %c0_35 = arith.constant 0 : index
    %c0_36 = arith.constant 0 : index
    %49 = vector.load %arg11[%c0_35, %c0_36] : memref<16x16xf32, #tpu.memory_space<vmem>>, vector<16x16xf32>
    %50 = vector.shape_cast %49 : vector<16x16xf32> to vector<1x16x16xf32>
    %51 = vector.broadcast %50 : vector<1x16x16xf32> to vector<8x16x16xf32>
    %cst_37 = arith.constant dense<0.000000e+00> : vector<8x16x16xf32>
    %52 = tpu.matmul %51, %48, %cst_37 {dimension_numbers = #tpu.dot_dimension_numbers<[2], [1], [1], [2], [0, 0, 0, 1, 1, 2], [0], [0]>} : vector<8x16x16xf32>, vector<8x16x16xf32>, vector<8x16x16xf32> -> vector<8x16x16xf32>
    %53 = vector.shape_cast %52 : vector<8x16x16xf32> to vector<8x256xf32>
    %54 = arith.addf %36, %53 : vector<8x256xf32>
    %c0_38 = arith.constant 0 : index
    %c0_39 = arith.constant 0 : index
    %c0_40 = arith.constant 0 : index
    %55 = vector.load %arg13[%c0_38, %c0_39, %c0_40] : memref<1x4x16xf32, #tpu.memory_space<vmem>>, vector<1x4x16xf32>
    %56 = vector.shape_cast %55 : vector<1x4x16xf32> to vector<4x16xf32>
    %cst_41 = arith.constant 0.000000e+00 : f32
    %57 = vector.broadcast %cst_41 : f32 to vector<4x16xf32>
    %58 = arith.maximumf %56, %57 : vector<4x16xf32>
    %59 = arith.truncf %58 : vector<4x16xf32> to vector<4x16xbf16>
    %c0_42 = arith.constant 0 : index
    %c0_43 = arith.constant 0 : index
    %60 = vector.load %arg14[%c0_42, %c0_43] : memref<8x4xbf16, #tpu.memory_space<vmem>>, vector<8x4xbf16>
    %cst_44 = arith.constant dense<0.000000e+00> : vector<8x16xf32>
    %61 = tpu.matmul %60, %59, %cst_44 {dimension_numbers = #tpu.dot_dimension_numbers<[1], [0], [0], [1], [0, 0, 1, 1], [], []>} : vector<8x4xbf16>, vector<4x16xbf16>, vector<8x16xf32> -> vector<8x16xf32>
    %62 = vector.shape_cast %61 : vector<8x16xf32> to vector<8x4x4xf32>
    %c0_45 = arith.constant 0 : index
    %c0_46 = arith.constant 0 : index
    %63 = vector.load %arg16[%c0_45, %c0_46] : memref<4x16xf32, #tpu.memory_space<vmem>>, vector<4x16xf32>
    %64 = vector.shape_cast %63 : vector<4x16xf32> to vector<1x4x16xf32>
    %65 = vector.broadcast %64 : vector<1x4x16xf32> to vector<8x4x16xf32>
    %cst_47 = arith.constant dense<0.000000e+00> : vector<8x4x16xf32>
    %66 = tpu.matmul %62, %65, %cst_47 {dimension_numbers = #tpu.dot_dimension_numbers<[2], [1], [1], [2], [0, 0, 0, 1, 1, 2], [0], [0]>} : vector<8x4x4xf32>, vector<8x4x16xf32>, vector<8x4x16xf32> -> vector<8x4x16xf32>
    %c0_48 = arith.constant 0 : index
    %c0_49 = arith.constant 0 : index
    %67 = vector.load %arg15[%c0_48, %c0_49] : memref<16x4xf32, #tpu.memory_space<vmem>>, vector<16x4xf32>
    %68 = vector.shape_cast %67 : vector<16x4xf32> to vector<1x16x4xf32>
    %69 = vector.broadcast %68 : vector<1x16x4xf32> to vector<8x16x4xf32>
    %cst_50 = arith.constant dense<0.000000e+00> : vector<8x16x16xf32>
    %70 = tpu.matmul %69, %66, %cst_50 {dimension_numbers = #tpu.dot_dimension_numbers<[2], [1], [1], [2], [0, 0, 0, 1, 1, 2], [0], [0]>} : vector<8x16x4xf32>, vector<8x4x16xf32>, vector<8x16x16xf32> -> vector<8x16x16xf32>
    %71 = vector.shape_cast %70 : vector<8x16x16xf32> to vector<8x256xf32>
    %72 = arith.addf %54, %71 : vector<8x256xf32>
    %c0_51 = arith.constant 0 : index
    %c0_52 = arith.constant 0 : index
    %73 = vector.load %arg17[%c0_51, %c0_52] : memref<8x1xf32, #tpu.memory_space<vmem>>, vector<8x1xf32>
    %74 = vector.broadcast %73 : vector<8x1xf32> to vector<8x256xf32>
    %75 = arith.mulf %72, %74 : vector<8x256xf32>
    %c0_53 = arith.constant 0 : index
    %c0_54 = arith.constant 0 : index
    %76 = vector.load %arg18[%c0_53, %c0_54] : memref<8x1xf32, #tpu.memory_space<vmem>>, vector<8x1xf32>
    %77 = vector.broadcast %76 : vector<8x1xf32> to vector<8x256xf32>
    %78 = arith.addf %75, %77 : vector<8x256xf32>
    %c0_55 = arith.constant 0 : index
    %c0_56 = arith.constant 0 : index
    %c0_57 = arith.constant 0 : index
    %79 = vector.load %arg19[%c0_55, %c0_56, %c0_57] : memref<1x8x256xf32, #tpu.memory_space<vmem>>, vector<1x8x256xf32>
    %80 = vector.shape_cast %79 : vector<1x8x256xf32> to vector<8x256xf32>
    %81 = vector.shape_cast %78 : vector<8x256xf32> to vector<1x8x256xf32>
    tpu.vector_store %arg19[%c0_55, %c0_56, %c0_57], %81 {strides = array<i32>} : memref<1x8x256xf32, #tpu.memory_space<vmem>>, vector<1x8x256xf32>,
    return
  }
  func.func @transform_0(%arg0: i32) -> (i32, i32, i32) {
    %c0_i32 = arith.constant 0 : i32
    %c0_i32_0 = arith.constant 0 : i32
    %c0_i32_1 = arith.constant 0 : i32
    return %arg0, %c0_i32, %c0_i32_0 : i32, i32, i32
  }
  func.func @transform_1(%arg0: i32) -> (i32, i32) {
    %c0_i32 = arith.constant 0 : i32
    %c0_i32_0 = arith.constant 0 : i32
    %c0_i32_1 = arith.constant 0 : i32
    return %c0_i32, %c0_i32_0 : i32, i32
  }
  func.func @transform_2(%arg0: i32) -> (i32, i32) {
    %c0_i32 = arith.constant 0 : i32
    %c0_i32_0 = arith.constant 0 : i32
    %c0_i32_1 = arith.constant 0 : i32
    return %c0_i32, %c0_i32_0 : i32, i32
  }
  func.func @transform_3(%arg0: i32) -> (i32, i32) {
    %c0_i32 = arith.constant 0 : i32
    %c0_i32_0 = arith.constant 0 : i32
    %c0_i32_1 = arith.constant 0 : i32
    return %c0_i32, %c0_i32_0 : i32, i32
  }
  func.func @transform_4(%arg0: i32) -> (i32, i32, i32) {
    %c0_i32 = arith.constant 0 : i32
    %c0_i32_0 = arith.constant 0 : i32
    %c0_i32_1 = arith.constant 0 : i32
    return %arg0, %c0_i32, %c0_i32_0 : i32, i32, i32
  }
  func.func @transform_5(%arg0: i32) -> (i32, i32) {
    %c0_i32 = arith.constant 0 : i32
    %c0_i32_0 = arith.constant 0 : i32
    %c0_i32_1 = arith.constant 0 : i32
    return %c0_i32, %c0_i32_0 : i32, i32
  }
  func.func @transform_6(%arg0: i32) -> (i32, i32) {
    %c0_i32 = arith.constant 0 : i32
    %c0_i32_0 = arith.constant 0 : i32
    %c0_i32_1 = arith.constant 0 : i32
    return %c0_i32, %c0_i32_0 : i32, i32
  }
  func.func @transform_7(%arg0: i32) -> (i32, i32) {
    %c0_i32 = arith.constant 0 : i32
    %c0_i32_0 = arith.constant 0 : i32
    %c0_i32_1 = arith.constant 0 : i32
    return %c0_i32, %c0_i32_0 : i32, i32
  }
  func.func @transform_8(%arg0: i32) -> (i32, i32, i32) {
    %c0_i32 = arith.constant 0 : i32
    %c0_i32_0 = arith.constant 0 : i32
    %c0_i32_1 = arith.constant 0 : i32
    return %arg0, %c0_i32, %c0_i32_0 : i32, i32, i32
  }
  func.func @transform_9(%arg0: i32) -> (i32, i32) {
    %c0_i32 = arith.constant 0 : i32
    %c0_i32_0 = arith.constant 0 : i32
    %c0_i32_1 = arith.constant 0 : i32
    return %c0_i32, %c0_i32_0 : i32, i32
  }
  func.func @transform_10(%arg0: i32) -> (i32, i32) {
    %c0_i32 = arith.constant 0 : i32
    %c0_i32_0 = arith.constant 0 : i32
    %c0_i32_1 = arith.constant 0 : i32
    return %c0_i32, %c0_i32_0 : i32, i32
  }
  func.func @transform_11(%arg0: i32) -> (i32, i32) {
    %c0_i32 = arith.constant 0 : i32
    %c0_i32_0 = arith.constant 0 : i32
    %c0_i32_1 = arith.constant 0 : i32
    return %c0_i32, %c0_i32_0 : i32, i32
  }
  func.func @transform_12(%arg0: i32) -> (i32, i32, i32) {
    %c0_i32 = arith.constant 0 : i32
    %c0_i32_0 = arith.constant 0 : i32
    %c0_i32_1 = arith.constant 0 : i32
    return %arg0, %c0_i32, %c0_i32_0 : i32, i32, i32
  }
  func.func @transform_13(%arg0: i32) -> (i32, i32) {
    %c0_i32 = arith.constant 0 : i32
    %c0_i32_0 = arith.constant 0 : i32
    %c0_i32_1 = arith.constant 0 : i32
    return %c0_i32, %c0_i32_0 : i32, i32
  }
  func.func @transform_14(%arg0: i32) -> (i32, i32) {
    %c0_i32 = arith.constant 0 : i32
    %c0_i32_0 = arith.constant 0 : i32
    %c0_i32_1 = arith.constant 0 : i32
    return %c0_i32, %c0_i32_0 : i32, i32
  }
  func.func @transform_15(%arg0: i32) -> (i32, i32) {
    %c0_i32 = arith.constant 0 : i32
    %c0_i32_0 = arith.constant 0 : i32
    %c0_i32_1 = arith.constant 0 : i32
    return %c0_i32, %c0_i32_0 : i32, i32
  }
  func.func @transform_16(%arg0: i32) -> (i32, i32) {
    %c0_i32 = arith.constant 0 : i32
    %c0_i32_0 = arith.constant 0 : i32
    %c0_i32_1 = arith.constant 0 : i32
    return %c0_i32, %c0_i32_0 : i32, i32
  }
  func.func @transform_17(%arg0: i32) -> (i32, i32) {
    %c0_i32 = arith.constant 0 : i32
    %c0_i32_0 = arith.constant 0 : i32
    %c0_i32_1 = arith.constant 0 : i32
    return %c0_i32, %c0_i32_0 : i32, i32
  }
  func.func @transform_18(%arg0: i32) -> (i32, i32, i32) {
    %c0_i32 = arith.constant 0 : i32
    %c0_i32_0 = arith.constant 0 : i32
    %c0_i32_1 = arith.constant 0 : i32
    return %arg0, %c0_i32, %c0_i32_0 : i32, i32, i32
  }
}

</mosaic_0001>

<bundles_post_ra>
// kernel: tpu_custom_call.1
= control target key start
LH: loop header
LB: loop body
LE: loop exit
PB: predicated region body
PF: predicated region fallthrough
CT: control target
= control target key end

     0   :  { %s10543_s0 = inlined_call_operand.hbm [shape: f32[2,4,16], index: 0, kind: input, shape index: {}]   ;;  %s10544_s1 = inlined_call_operand.vmem [shape: bf16[8,4], index: 1, kind: input, shape index: {}]   ;;  %s10545_s2 = inlined_call_operand.vmem [shape: f32[16,4], index: 2, kind: input, shape index: {}]   ;;  %s10546_s3 = inlined_call_operand.hbm [shape: f32[4,16], index: 3, kind: input, shape index: {}]   ;;  %s10547_s4 = inlined_call_operand.vmem [shape: f32[2,8,64], index: 4, kind: input, shape index: {}]   ;;  %s10548_s5 = inlined_call_operand.hbm [shape: bf16[8,8], index: 5, kind: input, shape index: {}]   ;;  %s10549_s6 = inlined_call_operand.vmem [shape: f32[16,8], index: 6, kind: input, shape index: {}]   ;;  %s10550_s7 = inlined_call_operand.hbm [shape: f32[8,16], index: 7, kind: input, shape index: {}]   ;;  %s10551_s8 = inlined_call_operand.vmem [shape: f32[2,16,256], index: 8, kind: input, shape index: {}]   ;;  %s10552_s9 = inlined_call_operand.hbm [shape: bf16[8,16], index: 9, kind: input, shape index: {}]   ;;  %s10553_s10 = inlined_call_operand.vmem [shape: f32[16,16], index: 10, kind: input, shape index: {}]   ;;  %s10554_s11 = inlined_call_operand.vmem [shape: f32[16,16], index: 11, kind: input, shape index: {}]   ;;  %s10555_s12 = inlined_call_operand.vmem [shape: f32[2,4,16], index: 12, kind: input, shape index: {}]   ;;  %s10556_s13 = inlined_call_operand.vmem [shape: bf16[8,4], index: 13, kind: input, shape index: {}]   ;;  %s10557_s14 = inlined_call_operand.vmem [shape: f32[16,4], index: 14, kind: input, shape index: {}]   ;;  %s10558_s15 = inlined_call_operand.vmem [shape: f32[4,16], index: 15, kind: input, shape index: {}]   ;;  %s10559_s16 = inlined_call_operand.vmem [shape: f32[8,1], index: 16, kind: input, shape index: {}]   ;;  %s10560_s17 = inlined_call_operand.vmem [shape: f32[8,1], index: 17, kind: input, shape index: {}]   ;;  %s10561_s18 = inlined_call_operand.hbm [shape: f32[2,8,256], index: 18, kind: output, shape index: {}]  }
   0x1   :  { %10589 = sst [smem:[#allocation20_spill]] %s10543_s0 }
   0x2   :  { %10590 = sst [smem:[#allocation21_spill]] %s10544_s1 }
   0x3   :  { %10591 = sst [smem:[#allocation22_spill]] %s10545_s2 }
   0x4   :  { %10592 = sst [smem:[#allocation23_spill]] %s10546_s3 }
   0x5   :  { %10593 = sst [smem:[#allocation24_spill]] %s10547_s4 }
   0x6   :  { %10594 = sst [smem:[#allocation25_spill]] %s10548_s5 }
   0x7   :  { %10595 = sst [smem:[#allocation26_spill]] %s10550_s7 }
   0x8   :  { %10596 = sst [smem:[#allocation27_spill]] %s10556_s13 }
   0x9   :  { %10597 = sst [smem:[#allocation28_spill]] %s10557_s14 }
   0xa   :  { %10598 = sst [smem:[#allocation29_spill]] %s10558_s15 }
   0xb   :  { %10599 = sst [smem:[#allocation30_spill]] %s10559_s16 }
   0xc   :  { %10600 = sst [smem:[#allocation31_spill]] %s10560_s17 }
   0xd   :  { %10601 = sst [smem:[#allocation32_spill]] %s10561_s18 }
   0xe   :  { %23 = vsyncpa [#allocation3], 0 }
   0xf   :  { %25 = vsyncpa [#allocation3 + $0x1], 0 }
  0x10   :  { %26 = vsyncpa [#allocation6], 0 }
  0x11   :  { %27 = vsyncpa [#allocation9], 0 }
  0x12   :  { %28 = vsyncpa [#allocation4], 0 }
  0x13   :  { %30 = vsyncpa [#allocation4 + $0x1], 0  ;;  %s9221_s27 = smov 0   ;;  %s9223_s28 = smov 0  }
  0x14   :  { %s9225_s29 = smov 0   ;;  %s9227_s30 = smov 0  }
  0x15 LB: > { %s9102_s0 = smov [#allocation5]   ;;  %s9242_s1 = sadd.s32 4294967295, %s9100_s30   ;;  %s9100_s30 = sphi %s9227_s30, %s10682_s30   ;;  %s9096_s29 = sphi %s9225_s29, %s10681_s29   ;;  %s9092_s28 = sphi %s9223_s28, %s10680_s28   ;;  %s9088_s27 = sphi %s9221_s27, %s10679_s27  }
  0x16   : > { %s484_s19 = sshll.u32 %s9102_s0, 4  ;;  %p7987_p0 = scmp.ge.s32.totalorder %s9100_s30, 1  ;;  %s9247_s19 = int_to_ptr.vmem [resolvable:$true] %s484_s19 }
  0x17   : > { %p10566_p1 = scmp.eq.s32.totalorder %s9242_s1, 0  ;;  %p465_p2 = scmp.lt.s32.totalorder %s9100_s30, 3 }
  0x18   : > { %s9103_s21 = smov [#allocation8]   ;;  %s9104_s2 = smov [#allocation7]  }
  0x19   : > { %p9249_p3 = pnand %p7987_p0, %p465_p2  ;;  %s509_s22 = sshll.u32 %s9103_s21, 4  ;;  %s9256_s22 = int_to_ptr.vmem [resolvable:$true] %s509_s22 }
  0x1a   : > { %s495_s23 = sshll.u32 %s9104_s2, 4  ;;  %s9105_s25 = smov [#allocation10]   ;;  %s9264_s23 = int_to_ptr.vmem [resolvable:$true] %s495_s23 }
  0x1b   : > { %s10602_s20 = scalar_select %p9249_p3, 1, 0 }
  0x1c   : > { %p8797_p5 = pneg %p9249_p3  ;;  %s9266_s26 = sshll.u32 %s9105_s25, 4  ;;  %s521_s26 = int_to_ptr.vmem [resolvable:$true] %s9266_s26 }
  0x1d   : > { %s10604_s3 = sld [smem:[#allocation23_spill]] }
  0x1e   : > { %p9260_p6 = pnand %p8797_p5, %p10566_p1 }
  0x20   : > { %p9276_p8 = pneg %p9260_p6 }
  0x23   : > { %s8884_s14 = scalar_lea.hbm %s10604_s3, 64 }
  0x24   : > { %p8885_p7 = scmp.ne.s32.totalorder %s10604_s3, %s8884_s14  ;;  %p8891_p11 = scmp.lt.u32.totalorder %s8884_s14, %s10604_s3 }
  0x26   : > { %p8887_p9 = pnand %p9276_p8, %p8885_p7 }
  0x28   : > { %p8888_p10 = pneg %p8887_p9 }
  0x2a   : > { %p8893_p12 = pnand %p8891_p11, %p8888_p10 }
  0x2c   : > { %8896 = shalt.err (!%p8893_p12)
}
  0x2d   : > { %s8897_s17 = scalar_lea.vmem %s9247_s19, 64  ;;  %p8905_p5 = scmp.lt.s32.totalorder %s9247_s19, %s9247_s19 }
  0x2e   : > { %p8898_p13 = scmp.ne.s32.totalorder %s9247_s19, %s8897_s17  ;;  %p8906_p4 = scmp.lt.s32.totalorder %s8897_s17, %s8897_s17 }
  0x30   : > { %p8900_p0 = pnand %p8898_p13, %p9276_p8  ;;  %p8907_p7 = por %p8906_p4, %p8905_p5 }
  0x32   : > { %p8901_p2 = pneg %p8900_p0 }
  0x34   : > { %p8908_p9 = pnand %p8907_p7, %p8901_p2 }
  0x36   : > { %8911 = shalt.err (!%p8908_p9)
}
  0x37   : > { %8800 = dma.hbm_to_vmem [thread:$0]  (!%p9260_p6), %s10604_s3, 64, %s9247_s19, [#allocation6]  }
  0x38   : > { %s10606_s7 = sld [smem:[#allocation26_spill]] }
  0x3e   : > { %s8912_s21 = scalar_lea.hbm %s10606_s7, 128 }
  0x3f   : > { %p8913_p10 = scmp.ne.s32.totalorder %s10606_s7, %s8912_s21  ;;  %p8919_p12 = scmp.lt.u32.totalorder %s8912_s21, %s10606_s7 }
  0x41   : > { %p8915_p4 = pnand %p8913_p10, %p9276_p8 }
  0x43   : > { %p8916_p11 = pneg %p8915_p4 }
  0x45   : > { %p8921_p13 = pnand %p8919_p12, %p8916_p11 }
  0x47   : > { %8924 = shalt.err (!%p8921_p13)
}
  0x48   : > { %s8925_s19 = scalar_lea.vmem %s9256_s22, 128  ;;  %p8933_p7 = scmp.lt.s32.totalorder %s9256_s22, %s9256_s22 }
  0x49   : > { %p8926_p0 = scmp.ne.s32.totalorder %s9256_s22, %s8925_s19  ;;  %p8934_p9 = scmp.lt.s32.totalorder %s8925_s19, %s8925_s19 }
  0x4b   : > { %p8928_p2 = pnand %p8926_p0, %p9276_p8  ;;  %p8935_p10 = por %p8934_p9, %p8933_p7 }
  0x4d   : > { %p8929_p5 = pneg %p8928_p2 }
  0x4f   : > { %p8936_p4 = pnand %p8935_p10, %p8929_p5 }
  0x51   : > { %8939 = shalt.err (!%p8936_p4)
}
  0x52   : > { %8806 = dma.hbm_to_vmem [thread:$0]  (!%p9260_p6), %s10606_s7, 128, %s9256_s22, [#allocation9]  }
  0x53   : > { %s10607_s5 = sld [smem:[#allocation25_spill]] }
  0x59   : > { %s8940_s18 = scalar_lea.hbm %s10607_s5, 64 }
  0x5a   : > { %p8941_p11 = scmp.ne.s32.totalorder %s10607_s5, %s8940_s18  ;;  %p8947_p0 = scmp.lt.u32.totalorder %s8940_s18, %s10607_s5 }
  0x5c   : > { %p8943_p12 = pnand %p8941_p11, %p9276_p8 }
  0x5e   : > { %p8944_p13 = pneg %p8943_p12 }
  0x60   : > { %p8949_p2 = pnand %p8947_p0, %p8944_p13 }
  0x62   : > { %8952 = shalt.err (!%p8949_p2)
}
  0x63   : > { %s8953_s22 = scalar_lea.vmem %s9264_s23, 64  ;;  %p8961_p10 = scmp.lt.s32.totalorder %s9264_s23, %s9264_s23 }
  0x64   : > { %p8954_p5 = scmp.ne.s32.totalorder %s9264_s23, %s8953_s22  ;;  %p8962_p4 = scmp.lt.s32.totalorder %s8953_s22, %s8953_s22 }
  0x66   : > { %p8956_p7 = pnand %p8954_p5, %p9276_p8  ;;  %p8963_p11 = por %p8962_p4, %p8961_p10 }
  0x68   : > { %p8957_p9 = pneg %p8956_p7 }
  0x6a   : > { %p8964_p12 = pnand %p8963_p11, %p8957_p9 }
  0x6c   : > { %8967 = shalt.err (!%p8964_p12)
}
  0x6d   : > { %8803 = dma.hbm_to_vmem [thread:$0]  (!%p9260_p6), %s10607_s5, 64, %s9264_s23, [#allocation6]  }
  0x6e   : > { %s8968_s16 = scalar_lea.hbm %s10552_s9, 64 }
  0x6f   : > { %p8969_p13 = scmp.ne.s32.totalorder %s10552_s9, %s8968_s16  ;;  %p8975_p5 = scmp.lt.u32.totalorder %s8968_s16, %s10552_s9 }
  0x71   : > { %p8971_p0 = pnand %p8969_p13, %p9276_p8 }
  0x73   : > { %p8972_p2 = pneg %p8971_p0 }
  0x75   : > { %p8977_p7 = pnand %p8975_p5, %p8972_p2 }
  0x77   : > { %8980 = shalt.err (!%p8977_p7)
}
  0x78   : > { %s8981_s17 = scalar_lea.vmem %s521_s26, 64  ;;  %p8989_p11 = scmp.lt.s32.totalorder %s521_s26, %s521_s26 }
  0x79   : > { %p8982_p9 = scmp.ne.s32.totalorder %s521_s26, %s8981_s17  ;;  %p8990_p12 = scmp.lt.s32.totalorder %s8981_s17, %s8981_s17 }
  0x7b   : > { %p8984_p10 = pnand %p8982_p9, %p9276_p8  ;;  %p8991_p1 = por %p8990_p12, %p8989_p11 }
  0x7d   : > { %p8985_p4 = pneg %p8984_p10 }
  0x7f   : > { %p8992_p3 = pnand %p8991_p1, %p8985_p4 }
  0x81   : > { %8995 = shalt.err (!%p8992_p3)
}
  0x82   : > { %8809 = dma.hbm_to_vmem [thread:$0]  (!%p9260_p6), %s10552_s9, 64, %s521_s26, [#allocation9]  }
  0x83   : > { %s7986_s2 = sadd.s32 4294967294, %s9100_s30   ;;  %s9364_s24 = sadd.s32 1, %s9100_s30  }
  0x84   : > { %s40_s19 = ssub.s32 %s9100_s30, %s9364_s24  ;;  %s43_s13 = sadd.s32 1, %s9096_s29 }
  0x85   : > { %p41_p1 = scmp.eq.s32.totalorder %s40_s19, 0  ;;  %p50_p3 = scmp.ne.s32.totalorder %s9096_s29, %s9092_s28 }
  0x86   : > { %p51_p8 = scmp.eq.s32.totalorder %s9100_s30, 0  ;;  %p56_p13 = scmp.ne.s32.totalorder %s9092_s28, %s9088_s27 }
  0x87   : > { %s9375_s15 = scalar_select %p41_p1, %s9096_s29, %s43_s13  }
  0x88   : > { %p9377_p0 = por %p51_p8, %p50_p3  ;;  %p10609_p2 = scmp.eq.s32.totalorder %s9242_s1, 0 }
  0x89   : > { %p452_p5 = scmp.eq.s32.totalorder %s9242_s1, 1  ;;  %p458_p7 = scmp.eq.s32.totalorder %s7986_s2, 1 }
  0x8a   : > { %p9383_p6 = por %p10609_p2, %p56_p13  ;;  %p8822_p9 = scmp.lt.s32.totalorder %s9100_s30, 2 }
  0x8b   : > { %s552_s16 = sand.u32 1, %s9096_s29   ;;  %p9390_p10 = por %p452_p5, %p50_p3 }
  0x8c   : > { %p9394_p4 = por %p458_p7, %p56_p13  ;;  %s7993_s21 = sshll.u32 %s552_s16, 2 }
  0x8d   : > { %s10611_s18 = scalar_select %p9390_p10, 1, 0 }
  0x8e   : > { %s10612_s0 = scalar_select %p9394_p4, 1, 0 }
  0x8f   : > { %s7994_s25 = sshll.u32 %s9100_s30, 6  ;;  %s10613_s22 = sld [smem:[#allocation20_spill]] }
  0x90   : > { %s556_s2 = scalar_lea.vmem [#allocation2], %s7993_s21  ;;  %p9408_p11 = pnand %p8822_p9, %p9377_p0 }
  0x91   : > { %s563_s13 = sshll.u32 %s556_s2, 4  ;;  %s553_s5 = scalar_lea.sflag [#allocation3], %s552_s16  ;;  %s9404_s13 = int_to_ptr.vmem [resolvable:$true] %s563_s13 }
  0x92   : > { %p8998_p1 = pneg %p9408_p11 }
  0x95   : > { %s9402_s19 = scalar_lea.hbm %s10613_s22, %s7994_s25  ;;  %s9001_s17 = scalar_lea.hbm %s10613_s22, 128 }
  0x96   : > { %s8996_s7 = scalar_lea.hbm %s9402_s19, 64  ;;  %p9002_p13 = scmp.lt.u32.totalorder %s9402_s19, %s10613_s22 }
  0x97   : > { %p8997_p12 = scmp.ne.s32.totalorder %s9402_s19, %s8996_s7  ;;  %p9003_p0 = scmp.lt.u32.totalorder %s9001_s17, %s8996_s7 }
  0x98   : > { %p9005_p5 = scmp.lt.u32.totalorder %s8996_s7, %s9402_s19 }
  0x99   : > { %p8999_p3 = pnand %p8998_p1, %p8997_p12  ;;  %p9004_p2 = por %p9003_p0, %p9002_p13 }
  0x9b   : > { %p9000_p8 = pneg %p8999_p3  ;;  %p9006_p7 = por %p9005_p5, %p9004_p2 }
  0x9d   : > { %p9007_p9 = pnand %p9006_p7, %p9000_p8 }
  0x9f   : > { %9010 = shalt.err (!%p9007_p9)
}
  0xa0   : > { %s9011_s16 = scalar_lea.vmem %s9404_s13, 64  ;;  %s9106_s2 = smov [#allocation2]  }
  0xa1   : > { %p9012_p12 = scmp.ne.s32.totalorder %s9404_s13, %s9011_s16  ;;  %s9016_s21 = sshll.u32 %s9106_s2, 4  ;;  %s9017_s21 = int_to_ptr.vmem [resolvable:$false] %s9016_s21 }
  0xa2   : > { %s9018_s25 = scalar_lea.vmem %s9017_s21, 128  ;;  %p9019_p10 = scmp.lt.s32.totalorder %s9404_s13, %s9017_s21 }
  0xa3   : > { %p9014_p3 = pnand %p9012_p12, %p8998_p1  ;;  %p9020_p13 = scmp.lt.s32.totalorder %s9018_s25, %s9011_s16 }
  0xa5   : > { %p9015_p4 = pneg %p9014_p3  ;;  %p9021_p0 = por %p9020_p13, %p9019_p10 }
  0xa7   : > { %p9022_p2 = pnand %p9021_p0, %p9015_p4 }
  0xa9   : > { %9025 = shalt.err (!%p9022_p2)
}
  0xaa   : > { %8813 = dma.hbm_to_vmem [thread:$0]  (!%p9408_p11), %s9402_s19, 64, %s9404_s13, %s553_s5  }
  0xab   : > { %p10615_p8 = scmp.ne.s32.totalorder %s10602_s20, 0 }
  0xad   : > { %594 = sbr.rel (%p10615_p8) target bundleno = 2906 (0xb5a), region = 92 }
  0xb4   : > { %s9440_s7 = sand.u32 1, %s9092_s28  }
  0xb5   : > { %s7996_s17 = sshll.u32 %s9440_s7, 2  ;;  %s597_s14 = scalar_lea.sflag [#allocation3], %s9440_s7 }
  0xb6   : > { %s600_s23 = scalar_lea.vmem [#allocation2], %s7996_s17 }
  0xb7   : > { %9071 = dma.done.wait (%p9383_p6), %s597_s14, 64  }
  0xb8   : > { %9073 = vsyncadd (%p9383_p6), %s597_s14, 4294967232  ;;  %p10616_p10 = scmp.eq.s32.totalorder %s9242_s1, 0 }
  0xba   : > { %9075 = dma.done.wait (%p10616_p10), [#allocation6], 128   ;;  %p10617_p4 = pmov %p10616_p10 }
  0xbc   : > { %9077 = vsyncadd (%p10617_p4), [#allocation6], 4294967168  ;;  %p10618_p11 = pmov %p10617_p4 }
  0xbd   : > { %p10619_p1 = pmov %p10617_p4 }
  0xbe   : > { %9079 = dma.done.wait (%p10618_p11), [#allocation9], 192  }
  0xbf   : > { %9081 = vsyncadd (%p10619_p1), [#allocation9], 4294967104  ;;  %v10573_v0 = vmov 0.0   ;;  %vm9108_vm0 = vmmov 0   ;;  %v696_v1 = vld [vmem:[%s600_s23] sm:$0xf]  ;;  %v763_v13 = vlaneseq }
  0xc0   : > { %8343 = vmatprep.subr.bf16.mxu0 %v10573_v0  ;;  %8345 = vmatprep.mubr.msk.bf16.mxu0 %vm9108_vm0, %v10573_v0  ;;  %v697_v2 = vmax.f32 %v696_v1, 0.0  ;;  %vm704_vm1 = vcmask 1041408   ;;  %s10620_s20 = sld [smem:[#allocation21_spill]]  ;;  %vm700_vm2 = vcmask 31744   ;;  %v9470_v6 = vld [vmem:[#allocation5] sm:$0xf] }
  0xc1   : > { %8349 = vmatprep.subr.mxu1 %v10573_v0  ;;  %8351 = vmatprep.mubr.msk.f32.mxu1 %vm9108_vm0, %v10573_v0  ;;  %vm830_vm3 = vcmask 1043456   ;;  %s10569_s26 = smov 116   ;;  %s10570_s19 = smov 124   ;;  %v9112_v11 = vmov 1983009808   ;;  %v764_v17 = vshrl.u32 %v763_v13, 7 }
  0xc2   : > { %v698_v3 = vpack.c.bf16 %v697_v2, %v697_v2  ;;  %8350 = vmatpush3.msk.msra.mxu1 %vm830_vm3, %v9470_v6  ;;  %s9111_s13 = smov 120   ;;  %v761_v12 = vunpack.c.l.s4 %v9112_v11  ;;  %v9113_v14 = vmov 1934713408   ;;  %s10621_s21 = sld [smem:[#allocation22_spill]]  ;;  %vm2402_vm4 = vcmask 64512  }
  0xc3   : > { %8354 = vmatprep.subr.mxu1 %v10573_v0  ;;  %v793_v15 = vunpack.c.l.s4 %v9113_v14  ;;  %p682_p6 = scmp.lt.s32.totalorder %s9242_s1, 1  ;;  %s10622_s4 = sld [smem:[#allocation24_spill]]  ;;  %vm2375_vm5 = vcmask 130048   ;;  %vm2377_vm6 = vcmask 261120   ;;  %vm2379_vm7 = vcmask 392192  }
  0xc4   : > { %v706_v4 = vsel %vm704_vm1, %v698_v3, 0  ;;  %v762_v16 = vunpack.c.0.s8 %v761_v12  ;;  %v2401_v3 = vld [vmem:[#allocation7] sm:$0xf]  ;;  %s10571_s16 = smov 112   ;;  %s10583_s2 = smov 96   ;;  %vm2381_vm8 = vcmask 523264  }
  0xc5   : > { %8344 = vmatpush3.bf16.msra.mxu0 %v706_v4  ;;  %v794_v20 = vunpack.c.0.s8 %v793_v15  ;;  %s9540_s25 = scalar_select %p682_p6, %s9242_s1, 1  ;;  %vm2383_vm9 = vcmask 654336   ;;  %vm2385_vm10 = vcmask 785408   ;;  %vm2387_vm11 = vcmask 916480  }
  0xc6   : > { %v699_v5 = vld [vmem:[%s10620_s20] sm:$0xf]  ;;  %8364 = vmatprep.subr.mxu0 %v10573_v0  ;;  %v9481_v21 = vsub.s32 %v762_v16, %v764_v17  ;;  %s9116_s17 = smov 104   ;;  %s10585_s14 = smov 80  }
  0xc7   : > { %v9483_v27 = vsub.s32 %v794_v20, %v764_v17  ;;  %s8002_s23 = sshll.u32 %s9540_s25, 3  ;;  %s9119_s3 = smov 72  }
  0xc8   : > { %8346 = vmatmul.mubr.msk.bf16.vlgmr.msra.gmra.mrb[0].mxu0 %vm700_vm2, %v699_v5  ;;  %v1415_v44 = vld [vmem:[%s10621_s21] sm:$0xff]  ;;  %v1416_v46 = vld [vmem:[%s10621_s21 + $0x8] sm:$0xff]  ;;  %p10676_p7 = scmp.ne.s32.totalorder %s10611_s18, 0 }
  0xc9   : > { %8366 = vmatprep.mubr.msk.f32.mxu0 %vm9108_vm0, %v10573_v0  ;;  %8365 = vmatpush3.msk.msra.mxu0 %vm830_vm3, %v9470_v6  ;;  %s685_s20 = scalar_lea.vmem %s10622_s4, %s8002_s23  ;;  %s9118_s23 = smov 88  }
  0xca   : > { %8374 = vmatprep.subr.mxu0 %v10573_v0  ;;  %v2398_v54 = vld [vmem:[%s685_s20] sm:$0xff]  ;;  %s10587_s20 = smov 48   ;;  %s10669_s4 = smov 48  }
  0xcb   : > { %v2399_v58 = vmax.f32 %v2398_v54, 0.0 }
  0xcd   : > { %v2400_v62 = vpack.c.bf16 %v2399_v58, %v2399_v58 }
  0xcf   : > { %v2407_v2 = vsel %vm830_vm3, %v2400_v62, 0 }
 0x19b   : > { %v742_v7 = vpop.f32.mrb[0].mxu0 }
 0x19c   : > { %755 = vrot.lane.b32.xlu1 %v742_v7, %s10569_s26  ;;  %749 = vrot.lane.b32.xlu0 %v742_v7, %s10570_s19  ;;  %v8347_v8 = vpop.f32.mrb[1].mxu0  ;;  %s9121_s26 = smov 64   ;;  %s9122_s19 = smov 32  }
 0x19d   : > { %v745_v9 = vpop.f32.mrb[2].mxu0 }
 0x19e   : > { %v8348_v10 = vpop.f32.mrb[3].mxu0 }
 0x1a0   : > { %752 = vrot.lane.b32.xlu0 %v742_v7, %s9111_s13 }
 0x20e   : > { %v756_v18 = vpop.permute.xlu1 %755  ;;  %v750_v19 = vpop.permute.xlu0 %749 }
 0x20f   : > { %v774_v22 = vcombine.low %v750_v19, %v756_v18  ;;  %v775_v23 = vcombine.high %v750_v19, %v756_v18 }
 0x211   : > { %v782_v28 = vrot.slane %v774_v22, %v9481_v21  ;;  %v789_v29 = vrot.slane %v775_v23, %v9481_v21 }
 0x212   : > { %v753_v24 = vpop.permute.xlu0 %752 }
 0x213   : > { %v758_v25 = vcombine.low %v742_v7, %v753_v24  ;;  %v759_v26 = vcombine.high %v742_v7, %v753_v24 }
 0x215   : > { %v766_v30 = vrot.slane %v758_v25, %v9481_v21  ;;  %v773_v31 = vrot.slane %v759_v26, %v9481_v21 }
 0x217   : > { %v790_v32 = vcombine.low %v766_v30, %v782_v28  ;;  %v791_v33 = vcombine.high %v766_v30, %v782_v28  ;;  %v806_v34 = vcombine.low %v773_v31, %v789_v29  ;;  %v807_v37 = vcombine.high %v773_v31, %v789_v29 }
 0x219   : > { %v805_v35 = vrot.slane %v791_v33, %v9483_v27  ;;  %v798_v36 = vrot.slane %v790_v32, %v9483_v27  ;;  %v814_v38 = vrot.slane %v806_v34, %v9483_v27  ;;  %v821_v41 = vrot.slane %v807_v37, %v9483_v27 }
 0x21b   : > { %v823_v39 = vcombine.high %v805_v35, %v10573_v0  ;;  %8352 = vmatmul.mubr.msk.f32.vlgmr.msra.gmra.mrb[0].mxu1 %vm700_vm2, %v798_v36  ;;  %v822_v40 = vcombine.high %v798_v36, %v10573_v0  ;;  %v824_v42 = vcombine.high %v814_v38, %v10573_v0  ;;  %v825_v43 = vcombine.high %v821_v41, %v10573_v0 }
 0x21c   : > { %8355 = vmatpush3.msk.msra.mxu1 %vm830_vm3, %v9470_v6  ;;  %8356 = vmatprep.mubr.msk.f32.mxu1 %vm9108_vm0, %v10573_v0 }
 0x21d   : > { %8367 = vmatmul.mubr.msk.f32.vlgmr.msra.gmra.mrb[4].mxu0 %vm700_vm2, %v823_v39  ;;  %8359 = vmatprep.subr.mxu1 %v10573_v0 }
 0x21e   : > { %8375 = vmatpush3.msk.msra.mxu0 %vm830_vm3, %v9470_v6  ;;  %8376 = vmatprep.mubr.msk.f32.mxu0 %vm9108_vm0, %v10573_v0 }
 0x21f   : > { %8357 = vmatmul.mubr.msk.f32.vlgmr.msra.gmra.mrb[2].mxu1 %vm700_vm2, %v822_v40  ;;  %8384 = vmatprep.subr.mxu0 %v10573_v0 }
 0x220   : > { %8360 = vmatpush3.msk.msra.mxu1 %vm830_vm3, %v9470_v6  ;;  %8361 = vmatprep.mubr.msk.f32.mxu1 %vm9108_vm0, %v10573_v0 }
 0x221   : > { %8377 = vmatmul.mubr.msk.f32.vlgmr.msra.gmra.mrb[6].mxu0 %vm700_vm2, %v824_v42  ;;  %8369 = vmatprep.subr.mxu1 %v10573_v0 }
 0x222   : > { %8385 = vmatpush3.msk.msra.mxu0 %vm830_vm3, %v9470_v6  ;;  %8386 = vmatprep.mubr.msk.f32.mxu0 %vm9108_vm0, %v10573_v0 }
 0x223   : > { %8362 = vmatmul.mubr.msk.f32.vlgmr.msra.gmra.mrb[4].mxu1 %vm700_vm2, %v805_v35 }
 0x224   : > { %8370 = vmatpush3.msk.msra.mxu1 %vm830_vm3, %v9470_v6  ;;  %8371 = vmatprep.mubr.msk.f32.mxu1 %vm9108_vm0, %v10573_v0 }
 0x225   : > { %8387 = vmatmul.mubr.msk.f32.vlgmr.msra.gmra.mrb[8].mxu0 %vm700_vm2, %v825_v43  ;;  %8379 = vmatprep.subr.mxu1 %v10573_v0 }
 0x226   : > { %8396 = vmatprep.mubr.msk.f32.mxu0 %vm700_vm2, %v1415_v44 }
 0x227   : > { %8372 = vmatmul.mubr.msk.f32.vlgmr.msra.gmra.mrb[6].mxu1 %vm700_vm2, %v814_v38 }
 0x228   : > { %8380 = vmatpush3.msk.msra.mxu1 %vm830_vm3, %v9470_v6  ;;  %8381 = vmatprep.mubr.msk.f32.mxu1 %vm9108_vm0, %v10573_v0 }
 0x22b   : > { %8382 = vmatmul.mubr.msk.f32.vlgmr.msra.gmra.mrb[8].mxu1 %vm700_vm2, %v821_v41 }
 0x22c   : > { %8391 = vmatprep.mubr.msk.f32.mxu1 %vm700_vm2, %v1415_v44 }
 0x2ee   : > { %v900_v45 = vpop.f32.mrb[0].mxu1 }
 0x2ef   : > { %v8353_v47 = vpop.f32.mrb[1].mxu1  ;;  %8389 = vmatprep.subr.msk.mxu1 %vm830_vm3, %v900_v45 }
 0x2f0   : > { %v1119_v48 = vpop.f32.mrb[4].mxu0  ;;  %8390 = vmatpush3.msk.msra.mxu1 %vm830_vm3, %v900_v45 }
 0x2f1   : > { %v8368_v49 = vpop.f32.mrb[5].mxu0  ;;  %8392 = vmatmul.mubr.msk.f32.vlgmr.msra.gmra.mrb[10].mxu1 %vm700_vm2, %v1416_v46 }
 0x2f2   : > { %v973_v50 = vpop.f32.mrb[2].mxu1  ;;  %8401 = vmatprep.mubr.msk.f32.mxu1 %vm700_vm2, %v1415_v44 }
 0x2f3   : > { %v8358_v51 = vpop.f32.mrb[3].mxu1  ;;  %8394 = vmatprep.subr.msk.mxu0 %vm830_vm3, %v973_v50 }
 0x2f4   : > { %v1265_v52 = vpop.f32.mrb[6].mxu0  ;;  %8395 = vmatpush3.msk.msra.mxu0 %vm830_vm3, %v973_v50 }
 0x2f5   : > { %v8378_v53 = vpop.f32.mrb[7].mxu0  ;;  %8397 = vmatmul.mubr.msk.f32.vlgmr.msra.gmra.mrb[10].mxu0 %vm700_vm2, %v1416_v46  ;;  %8404 = vmatprep.subr.msk.mxu0 %vm830_vm3, %v1119_v48 }
 0x2f6   : > { %v1046_v55 = vpop.f32.mrb[4].mxu1  ;;  %8405 = vmatpush3.msk.msra.mxu0 %vm830_vm3, %v1119_v48  ;;  %8406 = vmatprep.mubr.msk.f32.mxu0 %vm700_vm2, %v1415_v44 }
 0x2f7   : > { %v8363_v56 = vpop.f32.mrb[5].mxu1  ;;  %8399 = vmatprep.subr.msk.mxu1 %vm830_vm3, %v1046_v55  ;;  %8414 = vmatprep.subr.msk.mxu0 %vm830_vm3, %v1265_v52 }
 0x2f8   : > { %v1411_v57 = vpop.f32.mrb[8].mxu0  ;;  %8400 = vmatpush3.msk.msra.mxu1 %vm830_vm3, %v1046_v55 }
 0x2f9   : > { %v8388_v59 = vpop.f32.mrb[9].mxu0  ;;  %8402 = vmatmul.mubr.msk.f32.vlgmr.msra.gmra.mrb[12].mxu1 %vm700_vm2, %v1416_v46  ;;  %8407 = vmatmul.mubr.msk.f32.vlgmr.msra.gmra.mrb[12].mxu0 %vm700_vm2, %v1416_v46 }
 0x2fa   : > { %8415 = vmatpush3.msk.msra.mxu0 %vm830_vm3, %v1265_v52  ;;  %v1192_v60 = vpop.f32.mrb[6].mxu1  ;;  %8411 = vmatprep.mubr.msk.f32.mxu1 %vm700_vm2, %v1415_v44 }
 0x2fb   : > { %8424 = vmatprep.subr.msk.mxu0 %vm830_vm3, %v1411_v57  ;;  %v8373_v61 = vpop.f32.mrb[7].mxu1  ;;  %8409 = vmatprep.subr.msk.mxu1 %vm830_vm3, %v1192_v60 }
 0x2fc   : > { %8410 = vmatpush3.msk.msra.mxu1 %vm830_vm3, %v1192_v60  ;;  %8416 = vmatprep.mubr.msk.f32.mxu0 %vm700_vm2, %v1415_v44 }
 0x2fd   : > { %8412 = vmatmul.mubr.msk.f32.vlgmr.msra.gmra.mrb[14].mxu1 %vm700_vm2, %v1416_v46  ;;  %8417 = vmatmul.mubr.msk.f32.vlgmr.msra.gmra.mrb[14].mxu0 %vm700_vm2, %v1416_v46 }
 0x2fe   : > { %8425 = vmatpush3.msk.msra.mxu0 %vm830_vm3, %v1411_v57  ;;  %v1338_v63 = vpop.f32.mrb[8].mxu1  ;;  %8421 = vmatprep.mubr.msk.f32.mxu1 %vm700_vm2, %v1415_v44 }
 0x2ff   : > { %v8383_v1 = vpop.f32.mrb[9].mxu1  ;;  %8419 = vmatprep.subr.msk.mxu1 %vm830_vm3, %v1338_v63  ;;  %8426 = vmatprep.mubr.msk.f32.mxu0 %vm700_vm2, %v1415_v44 }
 0x300   : > { %8420 = vmatpush3.msk.msra.mxu1 %vm830_vm3, %v1338_v63  ;;  %8435 = vmatprep.subr.mxu0 %v10573_v0 }
 0x301   : > { %8422 = vmatmul.mubr.msk.f32.vlgmr.msra.gmra.mrb[16].mxu1 %vm700_vm2, %v1416_v46  ;;  %8427 = vmatmul.mubr.msk.f32.vlgmr.msra.gmra.mrb[16].mxu0 %vm700_vm2, %v1416_v46 }
 0x302   : > { %8429 = vmatprep.subr.bf16.mxu1 %v10573_v0  ;;  %8431 = vmatprep.mubr.msk.bf16.mxu1 %vm9108_vm0, %v10573_v0 }
 0x303   : > { %8430 = vmatpush3.bf16.msra.mxu1 %v2407_v2  ;;  %8437 = vmatprep.mubr.msk.f32.mxu0 %vm9108_vm0, %v10573_v0 }
 0x304   : > { %8445 = vmatprep.subr.mxu1 %v10573_v0 }
 0x306   : > { %8432 = vmatmul.mubr.msk.bf16.vlgmr.msra.gmra.mrb[20].mxu1 %vm2402_vm4, %v2401_v3 }
 0x307   : > { %8447 = vmatprep.mubr.msk.f32.mxu1 %vm9108_vm0, %v10573_v0 }
 0x3c4   : > { %v8393_v4 = vpop.f32.mrb[10].mxu1 }
 0x3c5   : > { %v1492_v5 = vpop.f32.mrb[11].mxu1 }
 0x3c8   : > { %v8398_v6 = vpop.f32.mrb[10].mxu0 }
 0x3c9   : > { %v1570_v7 = vpop.f32.mrb[11].mxu0 }
 0x3cc   : > { %v8403_v8 = vpop.f32.mrb[12].mxu1  ;;  %v8408_v9 = vpop.f32.mrb[12].mxu0 }
 0x3cd   : > { %v2183_v10 = vcombine.low %v8393_v4, %v8403_v8  ;;  %v2184_v11 = vcombine.high %v8393_v4, %v8403_v8  ;;  %v2199_v12 = vcombine.low %v8398_v6, %v8408_v9  ;;  %v2200_v13 = vcombine.high %v8398_v6, %v8408_v9  ;;  %v1648_v14 = vpop.f32.mrb[13].mxu1  ;;  %v1726_v15 = vpop.f32.mrb[13].mxu0 }
 0x3ce   : > { %v2047_v16 = vcombine.low %v1492_v5, %v1648_v14  ;;  %v2048_v17 = vcombine.high %v1492_v5, %v1648_v14  ;;  %v2063_v18 = vcombine.low %v1570_v7, %v1726_v15  ;;  %v2064_v19 = vcombine.high %v1570_v7, %v1726_v15 }
 0x3cf   : > { %v2191_v20 = vrot.slane %v2183_v10, %v9481_v21  ;;  %v2198_v22 = vrot.slane %v2184_v11, %v9481_v21  ;;  %v2207_v23 = vrot.slane %v2199_v12, %v9481_v21  ;;  %v2214_v24 = vrot.slane %v2200_v13, %v9481_v21 }
 0x3d0   : > { %v2055_v25 = vrot.slane %v2047_v16, %v9481_v21  ;;  %v2062_v26 = vrot.slane %v2048_v17, %v9481_v21  ;;  %v2071_v28 = vrot.slane %v2063_v18, %v9481_v21  ;;  %v2078_v29 = vrot.slane %v2064_v19, %v9481_v21  ;;  %v8413_v30 = vpop.f32.mrb[14].mxu1  ;;  %v8418_v31 = vpop.f32.mrb[14].mxu0 }
 0x3d1   : > { %v2247_v32 = vcombine.low %v2191_v20, %v2207_v23  ;;  %v2248_v33 = vcombine.high %v2191_v20, %v2207_v23  ;;  %v2263_v34 = vcombine.low %v2198_v22, %v2214_v24  ;;  %v2264_v35 = vcombine.high %v2198_v22, %v2214_v24  ;;  %v1804_v36 = vpop.f32.mrb[15].mxu1  ;;  %v1882_v37 = vpop.f32.mrb[15].mxu0 }
 0x3d2   : > { %v2111_v38 = vcombine.low %v2055_v25, %v2071_v28  ;;  %v2112_v39 = vcombine.high %v2055_v25, %v2071_v28  ;;  %v2127_v40 = vcombine.low %v2062_v26, %v2078_v29  ;;  %v2128_v41 = vcombine.high %v2062_v26, %v2078_v29 }
 0x3d3   : > { %v9599_v42 = vrot.slane %v2247_v32, %v9483_v27  ;;  %v9602_v43 = vrot.slane %v2248_v33, %v9483_v27  ;;  %v9605_v44 = vrot.slane %v2263_v34, %v9483_v27  ;;  %v9608_v45 = vrot.slane %v2264_v35, %v9483_v27 }
 0x3d4   : > { %v8423_v46 = vpop.f32.mrb[16].mxu1  ;;  %v8428_v47 = vpop.f32.mrb[16].mxu0  ;;  %v9611_v48 = vrot.slane %v2111_v38, %v9483_v27  ;;  %v9614_v49 = vrot.slane %v2112_v39, %v9483_v27  ;;  %v9617_v50 = vrot.slane %v2127_v40, %v9483_v27  ;;  %v9620_v51 = vrot.slane %v2128_v41, %v9483_v27 }
 0x3d5   : > { %v2215_v52 = vcombine.low %v8413_v30, %v8423_v46  ;;  %v2216_v53 = vcombine.high %v8413_v30, %v8423_v46  ;;  %v2231_v54 = vcombine.low %v8418_v31, %v8428_v47  ;;  %v2232_v55 = vcombine.high %v8418_v31, %v8428_v47  ;;  %v1960_v56 = vpop.f32.mrb[17].mxu1  ;;  %v2038_v57 = vpop.f32.mrb[17].mxu0  ;;  %v4515_v47 = vld [vmem:[%s10554_s11] sm:$0xff] }
 0x3d6   : > { %v2079_v58 = vcombine.low %v1804_v36, %v1960_v56  ;;  %v2080_v59 = vcombine.high %v1804_v36, %v1960_v56  ;;  %v2095_v60 = vcombine.low %v1882_v37, %v2038_v57  ;;  %v2096_v61 = vcombine.high %v1882_v37, %v2038_v57 }
 0x3d7   : > { %v2223_v62 = vrot.slane %v2215_v52, %v9481_v21  ;;  %v2230_v63 = vrot.slane %v2216_v53, %v9481_v21  ;;  %v2239_v1 = vrot.slane %v2231_v54, %v9481_v21  ;;  %v2246_v2 = vrot.slane %v2232_v55, %v9481_v21  ;;  %v9698_v53 = vld [vmem:[#allocation8] sm:$0xff] }
 0x3d8   : > { %v2087_v3 = vrot.slane %v2079_v58, %v9481_v21  ;;  %v2094_v4 = vrot.slane %v2080_v59, %v9481_v21  ;;  %v2103_v5 = vrot.slane %v2095_v60, %v9481_v21  ;;  %v2110_v6 = vrot.slane %v2096_v61, %v9481_v21  ;;  %8436 = vmatpush3.msra.mxu0 %v9698_v53 }
 0x3d9   : > { %v2279_v7 = vcombine.low %v2223_v62, %v2239_v1  ;;  %v2280_v8 = vcombine.high %v2223_v62, %v2239_v1  ;;  %v2295_v9 = vcombine.low %v2230_v63, %v2246_v2  ;;  %v2296_v10 = vcombine.high %v2230_v63, %v2246_v2  ;;  %v9630_v11 = vpop.f32.mrb[20].mxu1  ;;  %8446 = vmatpush3.msra.mxu1 %v9698_v53 }
 0x3da   : > { %v2143_v12 = vcombine.low %v2087_v3, %v2103_v5  ;;  %v2144_v13 = vcombine.high %v2087_v3, %v2103_v5  ;;  %v2159_v14 = vcombine.low %v2094_v4, %v2110_v6  ;;  %v2160_v15 = vcombine.high %v2094_v4, %v2110_v6  ;;  %2453 = vrot.lane.b32.xlu0 %v9630_v11, %s10571_s16  ;;  %v8433_v16 = vpop.f32.mrb[21].mxu1 }
 0x3db   : > { %2450 = vrot.lane.b32.xlu1 %v9630_v11, %s9111_s13  ;;  %v2446_v17 = vpop.f32.mrb[22].mxu1  ;;  %v9637_v18 = vrot.slane %v2279_v7, %v9483_v27  ;;  %v9640_v19 = vrot.slane %v2280_v8, %v9483_v27  ;;  %v9643_v20 = vrot.slane %v2295_v9, %v9483_v27  ;;  %v9646_v22 = vrot.slane %v2296_v10, %v9483_v27 }
 0x3dc   : > { %v8434_v23 = vpop.f32.mrb[23].mxu1  ;;  %v9649_v24 = vrot.slane %v2143_v12, %v9483_v27  ;;  %v9652_v25 = vrot.slane %v2144_v13, %v9483_v27  ;;  %v9655_v26 = vrot.slane %v2159_v14, %v9483_v27  ;;  %v9658_v28 = vrot.slane %v2160_v15, %v9483_v27  ;;  %8440 = vmatprep.subr.mxu0 %v10573_v0 }
 0x3dd   : > { %8455 = vmatprep.subr.mxu1 %v10573_v0 }
 0x3de   : > { %2459 = vrot.lane.b32.xlu0 %v9630_v11, %s10583_s2 }
 0x3df   : > { %2456 = vrot.lane.b32.xlu1 %v9630_v11, %s9116_s17  ;;  %s8151_s17 = sshll.u32 %s9540_s25, 5 }
 0x3e0   : > { %s690_s5 = scalar_lea.vmem %s10551_s8, %s8151_s17  ;;  %s9124_s17 = smov 16  }
 0x3e2   : > { %2465 = vrot.lane.b32.xlu0 %v9630_v11, %s10585_s14 }
 0x3e3   : > { %2462 = vrot.lane.b32.xlu1 %v9630_v11, %s9118_s23  ;;  %s10630_s23 = smov 124  }
 0x3e7   : > { %2468 = vrot.lane.b32.xlu1 %v9630_v11, %s9119_s3  ;;  %s8005_s3 = sshll.u32 %s9540_s25, 2  ;;  %s10636_s25 = smov 80  }
 0x44c   : > { %v2454_v54 = vpop.permute.xlu0 %2453 }
 0x44d   : > { %v2451_v55 = vpop.permute.xlu1 %2450  ;;  %v2471_v59 = vcombine.low %v9630_v11, %v2454_v54  ;;  %v2472_v3 = vcombine.high %v9630_v11, %v2454_v54 }
 0x44f   : > { %v2479_v4 = vrot.slane %v2471_v59, %v9481_v21  ;;  %v2486_v16 = vrot.slane %v2472_v3, %v9481_v21 }
 0x450   : > { %v2460_v56 = vpop.permute.xlu0 %2459 }
 0x451   : > { %v2457_v57 = vpop.permute.xlu1 %2456 }
 0x452   : > { %v2487_v58 = vcombine.low %v2451_v55, %v2457_v57  ;;  %v2488_v62 = vcombine.high %v2451_v55, %v2457_v57 }
 0x454   : > { %v2466_v60 = vpop.permute.xlu0 %2465  ;;  %v2495_v63 = vrot.slane %v2487_v58, %v9481_v21  ;;  %v2502_v8 = vrot.slane %v2488_v62, %v9481_v21 }
 0x455   : > { %v2463_v61 = vpop.permute.xlu1 %2462  ;;  %v2503_v1 = vcombine.low %v2460_v56, %v2466_v60  ;;  %v2504_v2 = vcombine.high %v2460_v56, %v2466_v60 }
 0x456   : > { %v2535_v9 = vcombine.low %v2479_v4, %v2495_v63  ;;  %v2536_v10 = vcombine.high %v2479_v4, %v2495_v63  ;;  %v2551_v54 = vcombine.low %v2486_v16, %v2502_v8  ;;  %v2552_v63 = vcombine.high %v2486_v16, %v2502_v8 }
 0x457   : > { %v2511_v12 = vrot.slane %v2503_v1, %v9481_v21  ;;  %v2518_v13 = vrot.slane %v2504_v2, %v9481_v21 }
 0x458   : > { %v2543_v55 = vrot.slane %v2535_v9, %v9483_v27  ;;  %v2550_v56 = vrot.slane %v2536_v10, %v9483_v27  ;;  %v2559_v1 = vrot.slane %v2551_v54, %v9483_v27  ;;  %v3192_v10 = vld [vmem:[%s10549_s6] sm:$0xff] }
 0x459   : > { %v2469_v5 = vpop.permute.xlu1 %2468 }
 0x45a   : > { %v2519_v6 = vcombine.low %v2463_v61, %v2469_v5  ;;  %v2520_v7 = vcombine.high %v2463_v61, %v2469_v5  ;;  %v2566_v5 = vrot.slane %v2552_v63, %v9483_v27 }
 0x45c   : > { %v2527_v14 = vrot.slane %v2519_v6, %v9481_v21  ;;  %v2534_v15 = vrot.slane %v2520_v7, %v9481_v21 }
 0x45e   : > { %v2567_v11 = vcombine.low %v2511_v12, %v2527_v14  ;;  %v2568_v17 = vcombine.high %v2511_v12, %v2527_v14  ;;  %v2583_v23 = vcombine.low %v2518_v13, %v2534_v15  ;;  %v2584_v59 = vcombine.high %v2518_v13, %v2534_v15  ;;  %v3193_v14 = vld [vmem:[%s10549_s6 + $0x8] sm:$0xff] }
 0x45f   : > { %v9120_v12 = vmov 0  }
 0x460   : > { %v2575_v57 = vrot.slane %v2567_v11, %v9483_v27  ;;  %v2582_v58 = vrot.slane %v2568_v17, %v9483_v27  ;;  %v2591_v60 = vrot.slane %v2583_v23, %v9483_v27  ;;  %v2598_v2 = vrot.slane %v2584_v59, %v9483_v27  ;;  %8882 = vset.pattern.permute.xlu1 %v9120_v12  ;;  %v4145_v11 = vld [vmem:[%s690_s5 + $0x8] sm:$0xff]  ;;  %v4147_v17 = vld [vmem:[%s690_s5 + $0x18] sm:$0xff] }
 0x461   : > { %8883 = vset.pattern.permute.xlu0 %v9120_v12  ;;  %v4149_v59 = vmax.f32 %v4145_v11, 0.0 }
 0x462   : > { %v2599_v61 = vcombine.low %v2543_v55, %v2575_v57  ;;  %v2601_v62 = vcombine.low %v2550_v56, %v2582_v58  ;;  %v2600_v3 = vcombine.high %v2543_v55, %v2575_v57  ;;  %v2603_v4 = vcombine.low %v2559_v1, %v2591_v60  ;;  %v4144_v57 = vld [vmem:[%s690_s5] sm:$0xff] }
 0x463   : > { %v2602_v6 = vcombine.high %v2550_v56, %v2582_v58  ;;  %v2605_v7 = vcombine.low %v2566_v5, %v2598_v2  ;;  %v2604_v8 = vcombine.high %v2559_v1, %v2591_v60  ;;  %v2606_v9 = vcombine.high %v2566_v5, %v2598_v2  ;;  %v4146_v58 = vld [vmem:[%s690_s5 + $0x10] sm:$0xff]  ;;  %s10674_s5 = sld [smem:[#allocation28_spill]] }
 0x464   : > { %8438 = vmatmul.mubr.msk.f32.vlgmr.msra.gmra.mrb[18].mxu0 %vm2402_vm4, %v2599_v61  ;;  %8448 = vmatmul.mubr.msk.f32.vlgmr.msra.gmra.mrb[18].mxu1 %vm2402_vm4, %v2601_v62  ;;  %v4151_v60 = vmax.f32 %v4147_v17, 0.0  ;;  %v4148_v63 = vmax.f32 %v4144_v57, 0.0  ;;  %v4150_v1 = vmax.f32 %v4146_v58, 0.0 }
 0x465   : > { %8441 = vmatpush3.msra.mxu0 %v9698_v53  ;;  %8442 = vmatprep.mubr.msk.f32.mxu0 %vm9108_vm0, %v10573_v0 }
 0x466   : > { %8456 = vmatpush3.msra.mxu1 %v9698_v53  ;;  %8457 = vmatprep.mubr.msk.f32.mxu1 %vm9108_vm0, %v10573_v0 }
 0x467   : > { %8450 = vmatprep.subr.mxu0 %v10573_v0  ;;  %8465 = vmatprep.subr.mxu1 %v10573_v0 }
 0x468   : > { %8443 = vmatmul.mubr.msk.f32.vlgmr.msra.gmra.mrb[20].mxu0 %vm2402_vm4, %v2600_v3  ;;  %8458 = vmatmul.mubr.msk.f32.vlgmr.msra.gmra.mrb[24].mxu1 %vm2402_vm4, %v2603_v4  ;;  %v4153_v4 = vpack.c.bf16 %v4151_v60, %v4149_v59 }
 0x469   : > { %8451 = vmatpush3.msra.mxu0 %v9698_v53  ;;  %8452 = vmatprep.mubr.msk.f32.mxu0 %vm9108_vm0, %v10573_v0 }
 0x46a   : > { %8466 = vmatpush3.msra.mxu1 %v9698_v53  ;;  %8467 = vmatprep.mubr.msk.f32.mxu1 %vm9108_vm0, %v10573_v0 }
 0x46b   : > { %8460 = vmatprep.subr.mxu0 %v10573_v0 }
 0x46c   : > { %8453 = vmatmul.mubr.msk.f32.vlgmr.msra.gmra.mrb[22].mxu0 %vm2402_vm4, %v2602_v6  ;;  %8468 = vmatmul.mubr.msk.f32.vlgmr.msra.gmra.mrb[26].mxu1 %vm2402_vm4, %v2605_v7  ;;  %v4152_v6 = vpack.c.bf16 %v4150_v1, %v4148_v63 }
 0x46d   : > { %8461 = vmatpush3.msra.mxu0 %v9698_v53  ;;  %8462 = vmatprep.mubr.msk.f32.mxu0 %vm9108_vm0, %v10573_v0 }
 0x46e   : > { %8470 = vmatprep.subr.mxu0 %v10573_v0  ;;  %8477 = vmatprep.mubr.msk.f32.mxu1 %vm2402_vm4, %v3192_v10 }
 0x470   : > { %8463 = vmatmul.mubr.msk.f32.vlgmr.msra.gmra.mrb[24].mxu0 %vm2402_vm4, %v2604_v8 }
 0x471   : > { %8471 = vmatpush3.msra.mxu0 %v9698_v53  ;;  %8472 = vmatprep.mubr.msk.f32.mxu0 %vm9108_vm0, %v10573_v0 }
 0x474   : > { %8473 = vmatmul.mubr.msk.f32.vlgmr.msra.gmra.mrb[26].mxu0 %vm2402_vm4, %v2606_v9  ;;  %v4154_v9 = vld [vmem:[#allocation10] sm:$0xf] }
 0x475   : > { %8482 = vmatprep.mubr.msk.f32.mxu0 %vm2402_vm4, %v3192_v10 }
 0x537   : > { %v2677_v53 = vpop.f32.mrb[18].mxu0  ;;  %v2823_v13 = vpop.f32.mrb[18].mxu1 }
 0x538   : > { %v8439_v15 = vpop.f32.mrb[19].mxu0  ;;  %v8449_v16 = vpop.f32.mrb[19].mxu1  ;;  %8475 = vmatprep.subr.mxu1 %v2677_v53 }
 0x539   : > { %8476 = vmatpush3.msra.mxu1 %v2677_v53 }
 0x53a   : > { %8478 = vmatmul.mubr.msk.f32.vlgmr.msra.gmra.mrb[28].mxu1 %vm2402_vm4, %v3193_v14  ;;  %8485 = vmatprep.subr.mxu1 %v2823_v13 }
 0x53b   : > { %v2750_v23 = vpop.f32.mrb[20].mxu0  ;;  %v2969_v54 = vpop.f32.mrb[24].mxu1  ;;  %8486 = vmatpush3.msra.mxu1 %v2823_v13  ;;  %8487 = vmatprep.mubr.msk.f32.mxu1 %vm2402_vm4, %v3192_v10 }
 0x53c   : > { %v8444_v55 = vpop.f32.mrb[21].mxu0  ;;  %v8459_v56 = vpop.f32.mrb[25].mxu1  ;;  %8480 = vmatprep.subr.mxu0 %v2750_v23  ;;  %8495 = vmatprep.subr.mxu1 %v2969_v54 }
 0x53d   : > { %8481 = vmatpush3.msra.mxu0 %v2750_v23 }
 0x53e   : > { %8483 = vmatmul.mubr.msk.f32.vlgmr.msra.gmra.mrb[28].mxu0 %vm2402_vm4, %v3193_v14  ;;  %8488 = vmatmul.mubr.msk.f32.vlgmr.msra.gmra.mrb[30].mxu1 %vm2402_vm4, %v3193_v14 }
 0x53f   : > { %8496 = vmatpush3.msra.mxu1 %v2969_v54  ;;  %v2896_v61 = vpop.f32.mrb[22].mxu0  ;;  %v3115_v62 = vpop.f32.mrb[26].mxu1  ;;  %8492 = vmatprep.mubr.msk.f32.mxu0 %vm2402_vm4, %v3192_v10 }
 0x540   : > { %v8454_v2 = vpop.f32.mrb[23].mxu0  ;;  %v8469_v3 = vpop.f32.mrb[27].mxu1  ;;  %8490 = vmatprep.subr.mxu0 %v2896_v61  ;;  %8505 = vmatprep.subr.mxu1 %v3115_v62 }
 0x541   : > { %8491 = vmatpush3.msra.mxu0 %v2896_v61  ;;  %8497 = vmatprep.mubr.msk.f32.mxu1 %vm2402_vm4, %v3192_v10 }
 0x542   : > { %8493 = vmatmul.mubr.msk.f32.vlgmr.msra.gmra.mrb[30].mxu0 %vm2402_vm4, %v3193_v14  ;;  %8498 = vmatmul.mubr.msk.f32.vlgmr.msra.gmra.mrb[32].mxu1 %vm2402_vm4, %v3193_v14 }
 0x543   : > { %8506 = vmatpush3.msra.mxu1 %v3115_v62  ;;  %v3042_v5 = vpop.f32.mrb[24].mxu0  ;;  %8502 = vmatprep.mubr.msk.f32.mxu0 %vm2402_vm4, %v3192_v10 }
 0x544   : > { %v8464_v7 = vpop.f32.mrb[25].mxu0  ;;  %8500 = vmatprep.subr.mxu0 %v3042_v5  ;;  %8507 = vmatprep.mubr.msk.f32.mxu1 %vm2402_vm4, %v3192_v10 }
 0x545   : > { %8501 = vmatpush3.msra.mxu0 %v3042_v5  ;;  %4158 = vmatprep.subr.bf16.mxu1 %v4153_v4 }
 0x546   : > { %8503 = vmatmul.mubr.msk.f32.vlgmr.msra.gmra.mrb[32].mxu0 %vm2402_vm4, %v3193_v14  ;;  %8508 = vmatmul.mubr.msk.f32.vlgmr.msra.gmra.mrb[34].mxu1 %vm2402_vm4, %v3193_v14 }
 0x547   : > { %v3188_v8 = vpop.f32.mrb[26].mxu0  ;;  %4159 = vmatpush1.bf16.msra.mxu1 %v4152_v6  ;;  %8512 = vmatprep.mubr.msk.f32.mxu0 %vm2402_vm4, %v3192_v10 }
 0x548   : > { %v8474_v53 = vpop.f32.mrb[27].mxu0  ;;  %8510 = vmatprep.subr.mxu0 %v3188_v8  ;;  %4190 = vmatprep.mubr.bf16.mxu1 %v9120_v12 }
 0x549   : > { %8511 = vmatpush3.msra.mxu0 %v3188_v8 }
 0x54a   : > { %8513 = vmatmul.mubr.msk.f32.vlgmr.msra.gmra.mrb[34].mxu0 %vm2402_vm4, %v3193_v14  ;;  %8072 = vmatmul.mubr.msk.bf16.vlgmr.msra.gmra.mrb[36].mxu1 %vm2375_vm5, %v4154_v9 }
 0x60d   : > { %v8479_v13 = vpop.f32.mrb[28].mxu1 }
 0x60e   : > { %v3266_v15 = vpop.f32.mrb[29].mxu1 }
 0x611   : > { %v8489_v16 = vpop.f32.mrb[30].mxu1  ;;  %v8484_v11 = vpop.f32.mrb[28].mxu0 }
 0x612   : > { %v3936_v17 = vcombine.low %v8479_v13, %v8489_v16  ;;  %v3937_v23 = vcombine.high %v8479_v13, %v8489_v16  ;;  %v3416_v54 = vpop.f32.mrb[31].mxu1  ;;  %v3341_v55 = vpop.f32.mrb[29].mxu0 }
 0x613   : > { %v3800_v10 = vcombine.low %v3266_v15, %v3416_v54  ;;  %v3801_v56 = vcombine.high %v3266_v15, %v3416_v54 }
 0x614   : > { %v3944_v63 = vrot.slane %v3936_v17, %v9481_v21  ;;  %v3951_v1 = vrot.slane %v3937_v23, %v9481_v21 }
 0x615   : > { %v8494_v57 = vpop.f32.mrb[30].mxu0  ;;  %v8499_v58 = vpop.f32.mrb[32].mxu1  ;;  %v3808_v4 = vrot.slane %v3800_v10, %v9481_v21  ;;  %v3815_v5 = vrot.slane %v3801_v56, %v9481_v21 }
 0x616   : > { %v3952_v59 = vcombine.low %v8484_v11, %v8494_v57  ;;  %v3953_v60 = vcombine.high %v8484_v11, %v8494_v57  ;;  %v3491_v12 = vpop.f32.mrb[31].mxu0  ;;  %v3566_v61 = vpop.f32.mrb[33].mxu1 }
 0x617   : > { %v3816_v62 = vcombine.low %v3341_v55, %v3491_v12  ;;  %v3817_v14 = vcombine.high %v3341_v55, %v3491_v12 }
 0x618   : > { %v3960_v2 = vrot.slane %v3952_v59, %v9481_v21  ;;  %v3967_v3 = vrot.slane %v3953_v60, %v9481_v21 }
 0x619   : > { %v3824_v6 = vrot.slane %v3816_v62, %v9481_v21  ;;  %v3831_v7 = vrot.slane %v3817_v14, %v9481_v21  ;;  %v8509_v8 = vpop.f32.mrb[34].mxu1  ;;  %v8504_v9 = vpop.f32.mrb[32].mxu0 }
 0x61a   : > { %v4000_v53 = vcombine.low %v3944_v63, %v3960_v2  ;;  %v4001_v13 = vcombine.high %v3944_v63, %v3960_v2  ;;  %v4016_v15 = vcombine.low %v3951_v1, %v3967_v3  ;;  %v4017_v16 = vcombine.high %v3951_v1, %v3967_v3  ;;  %v3716_v11 = vpop.f32.mrb[35].mxu1  ;;  %v3641_v17 = vpop.f32.mrb[33].mxu0 }
 0x61b   : > { %v3864_v23 = vcombine.low %v3808_v4, %v3824_v6  ;;  %v3865_v54 = vcombine.high %v3808_v4, %v3824_v6  ;;  %v3880_v55 = vcombine.low %v3815_v5, %v3831_v7  ;;  %v3881_v57 = vcombine.high %v3815_v5, %v3831_v7 }
 0x61c   : > { %v3968_v59 = vcombine.low %v8499_v58, %v8509_v8  ;;  %v3969_v10 = vcombine.high %v8499_v58, %v8509_v8  ;;  %v3832_v60 = vcombine.low %v3566_v61, %v3716_v11  ;;  %v3833_v56 = vcombine.high %v3566_v61, %v3716_v11 }
 0x61d   : > { %v8514_v12 = vpop.f32.mrb[34].mxu0  ;;  %v9791_v62 = vpop.f32.mrb[36].mxu1  ;;  %v9798_v1 = vrot.slane %v3864_v23, %v9483_v27  ;;  %v9801_v2 = vrot.slane %v3865_v54, %v9483_v27  ;;  %v9804_v3 = vrot.slane %v3880_v55, %v9483_v27  ;;  %v9807_v58 = vrot.slane %v3881_v57, %v9483_v27 }
 0x61e   : > { %4203 = vrot.lane.b32.xlu1 %v9791_v62, %s10583_s2  ;;  %v3791_v14 = vpop.f32.mrb[35].mxu0  ;;  %v9795_v63 = vpop.f32.mrb[37].mxu1  ;;  %v3984_v61 = vcombine.low %v8504_v9, %v8514_v12  ;;  %v3985_v4 = vcombine.high %v8504_v9, %v8514_v12  ;;  %4200 = vrot.lane.b32.xlu0 %v9791_v62, %s10571_s16  ;;  %v3976_v8 = vrot.slane %v3968_v59, %v9481_v21 }
 0x61f   : > { %v3848_v5 = vcombine.low %v3641_v17, %v3791_v14  ;;  %v3849_v6 = vcombine.high %v3641_v17, %v3791_v14  ;;  %v4196_v7 = vpop.f32.mrb[38].mxu1  ;;  %v3983_v11 = vrot.slane %v3969_v10, %v9481_v21  ;;  %v3840_v23 = vrot.slane %v3832_v60, %v9481_v21 }
 0x620   : > { %v3847_v54 = vrot.slane %v3833_v56, %v9481_v21  ;;  %v4197_v55 = vpop.f32.mrb[39].mxu1  ;;  %v3992_v57 = vrot.slane %v3984_v61, %v9481_v21  ;;  %v3999_v52 = vrot.slane %v3985_v4, %v9481_v21  ;;  %v9822_v17 = vrot.slane %v4000_v53, %v9483_v27 }
 0x621   : > { %v3856_v9 = vrot.slane %v3848_v5, %v9481_v21  ;;  %v3863_v12 = vrot.slane %v3849_v6, %v9481_v21  ;;  %v9825_v59 = vrot.slane %v4001_v13, %v9483_v27  ;;  %v9828_v10 = vrot.slane %v4016_v15, %v9483_v27 }
 0x622   : > { %4209 = vrot.lane.b32.xlu1 %v9791_v62, %s9121_s26  ;;  %v9831_v60 = vrot.slane %v4017_v16, %v9483_v27  ;;  %v4032_v56 = vcombine.low %v3976_v8, %v3992_v57  ;;  %v4033_v14 = vcombine.high %v3976_v8, %v3992_v57  ;;  %v4048_v61 = vcombine.low %v3983_v11, %v3999_v52 }
 0x623   : > { %10623 = vst [vmem:[#allocation16_spill] sm:$0xff] %v9828_v10  ;;  %v4049_v4 = vcombine.high %v3983_v11, %v3999_v52  ;;  %4206 = vrot.lane.b32.xlu0 %v9791_v62, %s10585_s14  ;;  %v3896_v5 = vcombine.low %v3840_v23, %v3856_v9  ;;  %v3897_v6 = vcombine.high %v3840_v23, %v3856_v9 }
 0x624   : > { %10624 = vst [vmem:[#allocation17_spill] sm:$0xff] %v9831_v60  ;;  %v3912_v53 = vcombine.low %v3847_v54, %v3863_v12  ;;  %v3913_v7 = vcombine.high %v3847_v54, %v3863_v12  ;;  %v9836_v13 = vrot.slane %v4032_v56, %v9483_v27  ;;  %v9839_v15 = vrot.slane %v4033_v14, %v9483_v27  ;;  %v4516_v12 = vld [vmem:[%s10554_s11 + $0x8] sm:$0xff] }
 0x625   : > { %v9842_v16 = vrot.slane %v4048_v61, %v9483_v27  ;;  %v9845_v8 = vrot.slane %v4049_v4, %v9483_v27  ;;  %v9850_v52 = vrot.slane %v3896_v5, %v9483_v27  ;;  %v9853_v11 = vrot.slane %v3897_v6, %v9483_v27 }
 0x626   : > { %4215 = vrot.lane.b32.xlu1 %v9791_v62, %s9122_s19  ;;  %v9856_v23 = vrot.slane %v3912_v53, %v9483_v27  ;;  %v9859_v54 = vrot.slane %v3913_v7, %v9483_v27  ;;  %v9909_v9 = vpack.c.bf16 %v4516_v12, %v4515_v47 }
 0x627   : > { %10625 = vst [vmem:[#allocation18_spill] sm:$0xff] %v9842_v16  ;;  %10626 = vst [vmem:[#allocation19_spill] sm:$0xff] %v9845_v8  ;;  %4212 = vrot.lane.b32.xlu0 %v9791_v62, %s10587_s20 }
 0x628   : > { %8714 = vmatprep.subr.bf16.mxu0 %v9909_v9  ;;  %8722 = vmatprep.subr.bf16.mxu1 %v9909_v9 }
 0x629   : > { %8716 = vmatpush3.bf16.msra.mxu0 %v9909_v9  ;;  %8724 = vmatpush3.bf16.msra.mxu1 %v9909_v9 }
 0x62a   : > { %4222 = vrot.lane.b32.xlu1 %v9795_v63, %s10571_s16  ;;  %8718 = vmatprep.subr.bf16.mxu0 %v9909_v9  ;;  %s10629_s16 = sld [smem:[#allocation29_spill]] }
 0x62b   : > { %4218 = vrot.lane.b32.xlu0 %v9791_v62, %s9124_s17  ;;  %8730 = vmatprep.subr.bf16.mxu1 %v9909_v9 }
 0x62e   : > { %4228 = vrot.lane.b32.xlu1 %v9795_v63, %s10585_s14  ;;  %s694_s14 = scalar_lea.vmem %s10555_s12, %s8005_s3  ;;  %s9125_s3 = smov [#allocation11]  }
 0x62f   : > { %4225 = vrot.lane.b32.xlu0 %v9795_v63, %s10583_s2  ;;  %s10638_s2 = smov 96  }
 0x632   : > { %4234 = vrot.lane.b32.xlu1 %v9795_v63, %s10587_s20 }
 0x633   : > { %4231 = vrot.lane.b32.xlu0 %v9795_v63, %s9121_s26 }
 0x636   : > { %4240 = vrot.lane.b32.xlu1 %v9795_v63, %s9124_s17 }
 0x637   : > { %4237 = vrot.lane.b32.xlu0 %v9795_v63, %s9122_s19 }
 0x690   : > { %v4204_v47 = vpop.permute.xlu1 %4203  ;;  %v4201_v12 = vpop.permute.xlu0 %4200 }
 0x691   : > { %v4243_v5 = vcombine.low %v9791_v62, %v4204_v47 }
 0x693   : > { %v4251_v46 = vrot.slane %v4243_v5, %v9481_v21 }
 0x694   : > { %v4210_v57 = vpop.permute.xlu1 %4209 }
 0x695   : > { %v4207_v7 = vpop.permute.xlu0 %4206 }
 0x696   : > { %v4259_v55 = vcombine.low %v4201_v12, %v4207_v7 }
 0x698   : > { %v4216_v53 = vpop.permute.xlu1 %4215  ;;  %v4267_v4 = vrot.slane %v4259_v55, %v9481_v21 }
 0x699   : > { %v4213_v6 = vpop.permute.xlu0 %4212  ;;  %v4275_v61 = vcombine.low %v4210_v57, %v4216_v53 }
 0x69a   : > { %v4307_v40 = vcombine.low %v4251_v46, %v4267_v4  ;;  %v4308_v32 = vcombine.high %v4251_v46, %v4267_v4  ;;  %v4276_v4 = vcombine.high %v4210_v57, %v4216_v53 }
 0x69b   : > { %v4283_v31 = vrot.slane %v4275_v61, %v9481_v21 }
 0x69c   : > { %v4223_v14 = vpop.permute.xlu1 %4222  ;;  %v4315_v34 = vrot.slane %v4307_v40, %v9483_v27  ;;  %v9933_v33 = vrot.slane %v4308_v32, %v9483_v27  ;;  %v4290_v57 = vrot.slane %v4276_v4, %v9481_v21 }
 0x69d   : > { %v4219_v56 = vpop.permute.xlu0 %4218 }
 0x69e   : > { %v4291_v41 = vcombine.low %v4213_v6, %v4219_v56  ;;  %v4292_v36 = vcombine.high %v4213_v6, %v4219_v56 }
 0x6a0   : > { %v4299_v30 = vrot.slane %v4291_v41, %v9481_v21  ;;  %v4229_v29 = vpop.permute.xlu1 %4228  ;;  %v4260_v41 = vcombine.high %v4201_v12, %v4207_v7  ;;  %v4306_v40 = vrot.slane %v4292_v36, %v9481_v21 }
 0x6a1   : > { %v4226_v39 = vpop.permute.xlu0 %4225  ;;  %v4395_v55 = vcombine.low %v4223_v14, %v4229_v29  ;;  %v4396_v53 = vcombine.high %v4223_v14, %v4229_v29 }
 0x6a2   : > { %v4339_v38 = vcombine.low %v4283_v31, %v4299_v30  ;;  %v4340_v37 = vcombine.high %v4283_v31, %v4299_v30  ;;  %v4379_v35 = vcombine.low %v9795_v63, %v4226_v39  ;;  %v4244_v31 = vcombine.high %v9791_v62, %v4204_v47 }
 0x6a3   : > { %v4403_v56 = vrot.slane %v4395_v55, %v9481_v21  ;;  %v4380_v6 = vcombine.high %v9795_v63, %v4226_v39  ;;  %v4355_v55 = vcombine.low %v4290_v57, %v4306_v40  ;;  %v4410_v39 = vrot.slane %v4396_v53, %v9481_v21 }
 0x6a4   : > { %v4347_v5 = vrot.slane %v4339_v38, %v9483_v27  ;;  %v9937_v46 = vrot.slane %v4340_v37, %v9483_v27  ;;  %v4235_v61 = vpop.permute.xlu1 %4234  ;;  %v4387_v32 = vrot.slane %v4379_v35, %v9481_v21  ;;  %v4274_v38 = vrot.slane %v4260_v41, %v9481_v21 }
 0x6a5   : > { %v4232_v0 = vpop.permute.xlu0 %4231  ;;  %v4258_v35 = vrot.slane %v4244_v31, %v9481_v21  ;;  %v4394_v29 = vrot.slane %v4380_v6, %v9481_v21 }
 0x6a6   : > { %v4371_v8 = vcombine.low %v4315_v34, %v4347_v5  ;;  %v4373_v30 = vcombine.low %v9933_v33, %v9937_v46  ;;  %v4443_v60 = vcombine.low %v4387_v32, %v4403_v56 }
 0x6a8   : > { %8519 = vmatprep.mubr.msk.f32.mxu0 %vm2375_vm5, %v4371_v8  ;;  %8533 = vmatprep.mubr.msk.f32.mxu1 %vm2375_vm5, %v4373_v30  ;;  %v4241_v37 = vpop.permute.xlu1 %4240  ;;  %v4444_v8 = vcombine.high %v4387_v32, %v4403_v56  ;;  %v4451_v32 = vrot.slane %v4443_v60, %v9483_v27 }
 0x6a9   : > { %v4238_v7 = vpop.permute.xlu0 %4237  ;;  %v4427_v36 = vcombine.low %v4235_v61, %v4241_v37  ;;  %v4428_v12 = vcombine.high %v4235_v61, %v4241_v37  ;;  %v4363_v61 = vrot.slane %v4355_v55, %v9483_v27  ;;  %v4372_v55 = vcombine.high %v4315_v34, %v4347_v5 }
 0x6aa   : > { %v4411_v62 = vcombine.low %v4232_v0, %v4238_v7  ;;  %v4412_v47 = vcombine.high %v4232_v0, %v4238_v7  ;;  %v4323_v0 = vcombine.low %v4258_v35, %v4274_v38  ;;  %v4458_v56 = vrot.slane %v4444_v8, %v9483_v27 }
 0x6ab   : > { %v4435_v41 = vrot.slane %v4427_v36, %v9481_v21  ;;  %v4442_v4 = vrot.slane %v4428_v12, %v9481_v21  ;;  %v4324_v12 = vcombine.high %v4258_v35, %v4274_v38  ;;  %v4374_v38 = vcombine.high %v9933_v33, %v9937_v46 }
 0x6ac   : > { %v4419_v30 = vrot.slane %v4411_v62, %v9481_v21  ;;  %v4426_v16 = vrot.slane %v4412_v47, %v9481_v21  ;;  %v4356_v62 = vcombine.high %v4290_v57, %v4306_v40  ;;  %v4459_v47 = vcombine.low %v4394_v29, %v4410_v39 }
 0x6ad   : > { %v4331_v6 = vrot.slane %v4323_v0, %v9483_v27  ;;  %v4338_v34 = vrot.slane %v4324_v12, %v9483_v27 }
 0x6ae   : > { %v4475_v63 = vcombine.low %v4419_v30, %v4435_v41  ;;  %v4476_v14 = vcombine.high %v4419_v30, %v4435_v41  ;;  %v4491_v31 = vcombine.low %v4426_v16, %v4442_v4  ;;  %v4492_v10 = vcombine.high %v4426_v16, %v4442_v4 }
 0x6af   : > { %v4375_v60 = vcombine.low %v4331_v6, %v4363_v61  ;;  %v4370_v8 = vrot.slane %v4356_v62, %v9483_v27  ;;  %v4460_v41 = vcombine.high %v4394_v29, %v4410_v39  ;;  %v4467_v40 = vrot.slane %v4459_v47, %v9483_v27  ;;  %v5166_v47 = vld [vmem:[%s10553_s10 + $0x8] sm:$0xff] }
 0x6b0   : > { %v4483_v37 = vrot.slane %v4475_v63, %v9483_v27  ;;  %v4490_v7 = vrot.slane %v4476_v14, %v9483_v27  ;;  %v4499_v30 = vrot.slane %v4491_v31, %v9483_v27  ;;  %v4506_v16 = vrot.slane %v4492_v10, %v9483_v27  ;;  %v9998_v63 = vld [vmem:[%s10553_s10] sm:$0xff] }
 0x6b1   : > { %v4474_v35 = vrot.slane %v4460_v41, %v9483_v27  ;;  %v4377_v4 = vcombine.low %v4338_v34, %v4370_v8  ;;  %v4376_v33 = vcombine.high %v4331_v6, %v4363_v61  ;;  %v4378_v39 = vcombine.high %v4338_v34, %v4370_v8 }
 0x6b2   : > { %v4507_v36 = vcombine.low %v4451_v32, %v4483_v37  ;;  %v4509_v53 = vcombine.low %v4458_v56, %v4490_v7  ;;  %v4508_v57 = vcombine.high %v4451_v32, %v4483_v37  ;;  %v4511_v5 = vcombine.low %v4467_v40, %v4499_v30 }
 0x6b3   : > { %v4510_v29 = vcombine.high %v4458_v56, %v4490_v7  ;;  %v4513_v10 = vcombine.low %v4474_v35, %v4506_v16  ;;  %v4512_v46 = vcombine.high %v4467_v40, %v4499_v30  ;;  %v4514_v0 = vcombine.high %v4474_v35, %v4506_v16 }
 0x6b4   : > { %8520 = vmatmul.mubr.msk.f32.vlgmr.msra.gmra.mrb[36].mxu0 %vm2375_vm5, %v4507_v36  ;;  %8534 = vmatmul.mubr.msk.f32.vlgmr.msra.gmra.mrb[40].mxu1 %vm2375_vm5, %v4509_v53  ;;  %v6117_v53 = vld [vmem:[%s694_s14] sm:$0xf]  ;;  %s10628_s14 = sld [smem:[#allocation27_spill]] }
 0x6b5   : > { %8720 = vmatpush3.bf16.msra.mxu0 %v9909_v9  ;;  %8526 = vmatprep.mubr.msk.f32.mxu0 %vm2375_vm5, %v4372_v55  ;;  %v6118_v8 = vmax.f32 %v6117_v53, 0.0 }
 0x6b6   : > { %8732 = vmatpush3.bf16.msra.mxu1 %v9909_v9  ;;  %8547 = vmatprep.mubr.msk.f32.mxu1 %vm2375_vm5, %v4375_v60 }
 0x6b7   : > { %8726 = vmatprep.subr.bf16.mxu0 %v9909_v9  ;;  %8738 = vmatprep.subr.bf16.mxu1 %v9909_v9 }
 0x6b8   : > { %8527 = vmatmul.mubr.msk.f32.vlgmr.msra.gmra.mrb[38].mxu0 %vm2375_vm5, %v4508_v57 }
 0x6b9   : > { %8548 = vmatmul.mubr.msk.f32.vlgmr.msra.gmra.mrb[42].mxu1 %vm2375_vm5, %v4511_v5  ;;  %8728 = vmatpush3.bf16.msra.mxu0 %v9909_v9  ;;  %v6119_v5 = vpack.c.bf16 %v6118_v8, %v6118_v8 }
 0x6ba   : > { %8540 = vmatprep.mubr.msk.f32.mxu0 %vm2375_vm5, %v4374_v38  ;;  %8740 = vmatpush3.bf16.msra.mxu1 %v9909_v9 }
 0x6bb   : > { %8561 = vmatprep.mubr.msk.f32.mxu1 %vm2375_vm5, %v4377_v4  ;;  %8734 = vmatprep.subr.bf16.mxu0 %v9909_v9 }
 0x6bc   : > { %8541 = vmatmul.mubr.msk.f32.vlgmr.msra.gmra.mrb[40].mxu0 %vm2375_vm5, %v4510_v29  ;;  %v6125_v29 = vsel %vm704_vm1, %v6119_v5, 0 }
 0x6bd   : > { %8562 = vmatmul.mubr.msk.f32.vlgmr.msra.gmra.mrb[44].mxu1 %vm2375_vm5, %v4513_v10  ;;  %8736 = vmatpush3.bf16.msra.mxu0 %v9909_v9 }
 0x6be   : > { %8554 = vmatprep.mubr.msk.f32.mxu0 %vm2375_vm5, %v4376_v33  ;;  %8742 = vmatprep.subr.bf16.mxu0 %v9909_v9  ;;  %v10627_v33 = vmov 0.0  }
 0x6bf   : > { %8575 = vmatprep.mubr.msk.f32.mxu1 %vm2375_vm5, %v9998_v63 }
 0x6c0   : > { %8555 = vmatmul.mubr.msk.f32.vlgmr.msra.gmra.mrb[42].mxu0 %vm2375_vm5, %v4512_v46  ;;  %v6120_v46 = vld [vmem:[%s10628_s14] sm:$0xf]  ;;  %s10640_s14 = smov 112  }
 0x6c1   : > { %8744 = vmatpush3.bf16.msra.mxu0 %v9909_v9  ;;  %8568 = vmatprep.mubr.msk.f32.mxu0 %vm2375_vm5, %v4378_v39 }
 0x6c4   : > { %8569 = vmatmul.mubr.msk.f32.vlgmr.msra.gmra.mrb[44].mxu0 %vm2375_vm5, %v4514_v0 }
 0x6c5   : > { %8582 = vmatprep.mubr.msk.f32.mxu0 %vm2375_vm5, %v9998_v63 }
 0x787   : > { %v8521_v14 = vpop.f32.mrb[36].mxu0  ;;  %v8535_v61 = vpop.f32.mrb[40].mxu1 }
 0x788   : > { %v4589_v9 = vpop.f32.mrb[37].mxu0  ;;  %v4751_v31 = vpop.f32.mrb[41].mxu1 }
 0x789   : > { %v8745_v32 = vpack.c.bf16 %v8521_v14, %v4589_v9  ;;  %v8753_v56 = vpack.c.bf16 %v8535_v61, %v4751_v31 }
 0x78b   : > { %v8528_v37 = vpop.f32.mrb[38].mxu0  ;;  %8746 = vmatprep.subr.bf16.mxu1 %v8745_v32 }
 0x78c   : > { %v8549_v7 = vpop.f32.mrb[42].mxu1  ;;  %v4670_v62 = vpop.f32.mrb[39].mxu0  ;;  %8748 = vmatpush3.bf16.msra.mxu1 %v8745_v32 }
 0x78d   : > { %v8749_v6 = vpack.c.bf16 %v8528_v37, %v4670_v62  ;;  %v4913_v36 = vpop.f32.mrb[43].mxu1  ;;  %8754 = vmatprep.subr.bf16.mxu1 %v8753_v56 }
 0x78e   : > { %v8761_v12 = vpack.c.bf16 %v8549_v7, %v4913_v36 }
 0x78f   : > { %v8542_v30 = vpop.f32.mrb[40].mxu0  ;;  %8576 = vmatmul.mubr.msk.f32.vlgmr.msra.gmra.mrb[46].mxu1 %vm2375_vm5, %v5166_v47  ;;  %8750 = vmatprep.subr.bf16.mxu0 %v8749_v6 }
 0x790   : > { %v8563_v55 = vpop.f32.mrb[44].mxu1  ;;  %v4832_v60 = vpop.f32.mrb[41].mxu0  ;;  %8752 = vmatpush3.bf16.msra.mxu0 %v8749_v6  ;;  %8756 = vmatpush3.bf16.msra.mxu1 %v8753_v56 }
 0x791   : > { %v8757_v41 = vpack.c.bf16 %v8542_v30, %v4832_v60  ;;  %v5075_v40 = vpop.f32.mrb[45].mxu1  ;;  %8762 = vmatprep.subr.bf16.mxu1 %v8761_v12  ;;  %8589 = vmatprep.mubr.msk.f32.mxu1 %vm2375_vm5, %v9998_v63 }
 0x792   : > { %v8769_v57 = vpack.c.bf16 %v8563_v55, %v5075_v40 }
 0x793   : > { %v8556_v34 = vpop.f32.mrb[42].mxu0  ;;  %8583 = vmatmul.mubr.msk.f32.vlgmr.msra.gmra.mrb[46].mxu0 %vm2375_vm5, %v5166_v47  ;;  %8590 = vmatmul.mubr.msk.f32.vlgmr.msra.gmra.mrb[48].mxu1 %vm2375_vm5, %v5166_v47 }
 0x794   : > { %8758 = vmatprep.subr.bf16.mxu0 %v8757_v41  ;;  %v4994_v16 = vpop.f32.mrb[43].mxu0  ;;  %8764 = vmatpush3.bf16.msra.mxu1 %v8761_v12 }
 0x795   : > { %v8765_v38 = vpack.c.bf16 %v8556_v34, %v4994_v16  ;;  %8760 = vmatpush3.bf16.msra.mxu0 %v8757_v41  ;;  %8770 = vmatprep.subr.bf16.mxu1 %v8769_v57 }
 0x796   : > { %8596 = vmatprep.mubr.msk.f32.mxu0 %vm2375_vm5, %v9998_v63  ;;  %8603 = vmatprep.mubr.msk.f32.mxu1 %vm2375_vm5, %v9998_v63 }
 0x797   : > { %v8570_v35 = vpop.f32.mrb[44].mxu0  ;;  %8604 = vmatmul.mubr.msk.f32.vlgmr.msra.gmra.mrb[50].mxu1 %vm2375_vm5, %v5166_v47  ;;  %8766 = vmatprep.subr.bf16.mxu0 %v8765_v38 }
 0x798   : > { %8597 = vmatmul.mubr.msk.f32.vlgmr.msra.gmra.mrb[48].mxu0 %vm2375_vm5, %v5166_v47  ;;  %v5156_v4 = vpop.f32.mrb[45].mxu0  ;;  %8772 = vmatpush3.bf16.msra.mxu1 %v8769_v57 }
 0x799   : > { %v8773_v10 = vpack.c.bf16 %v8570_v35, %v5156_v4  ;;  %8768 = vmatpush3.bf16.msra.mxu0 %v8765_v38  ;;  %8610 = vmatprep.mubr.msk.f32.mxu0 %vm2375_vm5, %v9998_v63 }
 0x79a   : > { %8617 = vmatprep.mubr.msk.f32.mxu1 %vm2375_vm5, %v9998_v63  ;;  %8627 = vmatprep.subr.bf16.mxu1 %v10627_v33 }
 0x79b   : > { %8618 = vmatmul.mubr.msk.f32.vlgmr.msra.gmra.mrb[52].mxu1 %vm2375_vm5, %v5166_v47  ;;  %8774 = vmatprep.subr.bf16.mxu0 %v8773_v10 }
 0x79c   : > { %8611 = vmatmul.mubr.msk.f32.vlgmr.msra.gmra.mrb[50].mxu0 %vm2375_vm5, %v5166_v47  ;;  %8628 = vmatpush3.bf16.msra.mxu1 %v6125_v29 }
 0x79d   : > { %8776 = vmatpush3.bf16.msra.mxu0 %v8773_v10  ;;  %8624 = vmatprep.mubr.msk.f32.mxu0 %vm2375_vm5, %v9998_v63 }
 0x79e   : > { %8629 = vmatprep.mubr.msk.bf16.mxu1 %vm9108_vm0, %v10627_v33  ;;  %8633 = vmatprep.subr.mxu0 %v10627_v33 }
 0x79f   : > { %8630 = vmatmul.mubr.msk.bf16.vlgmr.msra.gmra.mrb[56].mxu1 %vm700_vm2, %v6120_v46  ;;  %8643 = vmatprep.subr.mxu1 %v10627_v33 }
 0x7a0   : > { %8625 = vmatmul.mubr.msk.f32.vlgmr.msra.gmra.mrb[52].mxu0 %vm2375_vm5, %v5166_v47  ;;  %8645 = vmatprep.mubr.msk.f32.mxu1 %vm9108_vm0, %v10627_v33 }
 0x7a1   : > { %8635 = vmatprep.mubr.msk.f32.mxu0 %vm9108_vm0, %v10627_v33 }
 0x862   : > { %v8577_v39 = vpop.f32.mrb[46].mxu1 }
 0x863   : > { %v5239_v0 = vpop.f32.mrb[47].mxu1 }
 0x866   : > { %v8591_v63 = vpop.f32.mrb[48].mxu1  ;;  %v8584_v14 = vpop.f32.mrb[46].mxu0 }
 0x867   : > { %v5909_v61 = vcombine.low %v8577_v39, %v8591_v63  ;;  %v5910_v9 = vcombine.high %v8577_v39, %v8591_v63  ;;  %v5389_v31 = vpop.f32.mrb[49].mxu1  ;;  %v5314_v32 = vpop.f32.mrb[47].mxu0 }
 0x868   : > { %v5773_v56 = vcombine.low %v5239_v0, %v5389_v31  ;;  %v5774_v37 = vcombine.high %v5239_v0, %v5389_v31 }
 0x869   : > { %v5917_v12 = vrot.slane %v5909_v61, %v9481_v21  ;;  %v5924_v30 = vrot.slane %v5910_v9, %v9481_v21 }
 0x86a   : > { %v8605_v7 = vpop.f32.mrb[50].mxu1  ;;  %v5781_v8 = vrot.slane %v5773_v56, %v9481_v21  ;;  %v5788_v41 = vrot.slane %v5774_v37, %v9481_v21 }
 0x86b   : > { %v8598_v62 = vpop.f32.mrb[48].mxu0  ;;  %v5539_v6 = vpop.f32.mrb[51].mxu1 }
 0x86c   : > { %v5925_v47 = vcombine.low %v8584_v14, %v8598_v62  ;;  %v5926_v36 = vcombine.high %v8584_v14, %v8598_v62  ;;  %v5464_v53 = vpop.f32.mrb[49].mxu0 }
 0x86d   : > { %v5789_v55 = vcombine.low %v5314_v32, %v5464_v53  ;;  %v5790_v60 = vcombine.high %v5314_v32, %v5464_v53 }
 0x86e   : > { %v5933_v40 = vrot.slane %v5925_v47, %v9481_v21  ;;  %v5940_v57 = vrot.slane %v5926_v36, %v9481_v21  ;;  %v8619_v34 = vpop.f32.mrb[52].mxu1 }
 0x86f   : > { %v5797_v16 = vrot.slane %v5789_v55, %v9481_v21  ;;  %v5804_v5 = vrot.slane %v5790_v60, %v9481_v21  ;;  %v5941_v38 = vcombine.low %v8605_v7, %v8619_v34  ;;  %v5942_v35 = vcombine.high %v8605_v7, %v8619_v34  ;;  %v5689_v4 = vpop.f32.mrb[53].mxu1  ;;  %v8612_v29 = vpop.f32.mrb[50].mxu0  ;;  %v10060_v7 = vld [vmem:[%s10629_s16] sm:$0xf]  ;;  %s10666_s16 = sld [smem:[#allocation30_spill]] }
 0x870   : > { %v5973_v10 = vcombine.low %v5917_v12, %v5933_v40  ;;  %v5974_v46 = vcombine.high %v5917_v12, %v5933_v40  ;;  %v5989_v39 = vcombine.low %v5924_v30, %v5940_v57  ;;  %v5990_v0 = vcombine.high %v5924_v30, %v5940_v57  ;;  %v5614_v63 = vpop.f32.mrb[51].mxu0  ;;  %8634 = vmatpush3.msk.msra.mxu0 %vm830_vm3, %v10060_v7 }
 0x871   : > { %v5837_v14 = vcombine.low %v5781_v8, %v5797_v16  ;;  %v5838_v61 = vcombine.high %v5781_v8, %v5797_v16  ;;  %v5853_v9 = vcombine.low %v5788_v41, %v5804_v5  ;;  %v5854_v31 = vcombine.high %v5788_v41, %v5804_v5  ;;  %8644 = vmatpush3.msk.msra.mxu1 %vm830_vm3, %v10060_v7 }
 0x872   : > { %v5949_v32 = vrot.slane %v5941_v38, %v9481_v21  ;;  %v5956_v56 = vrot.slane %v5942_v35, %v9481_v21  ;;  %v5805_v37 = vcombine.low %v5539_v6, %v5689_v4  ;;  %v5806_v62 = vcombine.high %v5539_v6, %v5689_v4  ;;  %v10055_v47 = vpop.f32.mrb[56].mxu1  ;;  %8638 = vmatprep.subr.mxu0 %v10627_v33 }
 0x873   : > { %v8626_v36 = vpop.f32.mrb[52].mxu0  ;;  %6171 = vrot.lane.b32.xlu1 %v10055_v47, %s9111_s13  ;;  %6168 = vrot.lane.b32.xlu0 %v10055_v47, %s10630_s23  ;;  %v8631_v53 = vpop.f32.mrb[57].mxu1  ;;  %v10067_v12 = vrot.slane %v5974_v46, %v9483_v27  ;;  %v10070_v6 = vrot.slane %v5973_v10, %v9483_v27  ;;  %v10073_v30 = vrot.slane %v5989_v39, %v9483_v27  ;;  %s10631_s13 = smov 116  }
 0x874   : > { %v5813_v55 = vrot.slane %v5805_v37, %v9481_v21  ;;  %v5820_v60 = vrot.slane %v5806_v62, %v9481_v21  ;;  %v5957_v8 = vcombine.low %v8612_v29, %v8626_v36  ;;  %v5958_v41 = vcombine.high %v8612_v29, %v8626_v36  ;;  %v5764_v40 = vpop.f32.mrb[53].mxu0  ;;  %v6164_v57 = vpop.f32.mrb[58].mxu1  ;;  %8653 = vmatprep.subr.mxu1 %v10627_v33 }
 0x875   : > { %v5821_v34 = vcombine.low %v5614_v63, %v5764_v40  ;;  %v5822_v16 = vcombine.high %v5614_v63, %v5764_v40  ;;  %v8632_v5 = vpop.f32.mrb[59].mxu1  ;;  %v10080_v38 = vrot.slane %v5990_v0, %v9483_v27  ;;  %v10083_v35 = vrot.slane %v5838_v61, %v9483_v27 }
 0x876   : > { %v5965_v4 = vrot.slane %v5957_v8, %v9481_v21  ;;  %v5972_v29 = vrot.slane %v5958_v41, %v9481_v21  ;;  %v10090_v10 = vrot.slane %v5837_v14, %v9483_v27  ;;  %v10093_v46 = vrot.slane %v5853_v9, %v9483_v27 }
 0x877   : > { %v5829_v39 = vrot.slane %v5821_v34, %v9481_v21  ;;  %v5836_v0 = vrot.slane %v5822_v16, %v9481_v21  ;;  %6174 = vrot.lane.b32.xlu0 %v10055_v47, %s10631_s13  ;;  %v10632_v63 = vcombine.high %v9611_v48, %v9649_v24  ;;  %v10105_v14 = vrot.slane %v5854_v31, %v9483_v27 }
 0x878   : > { %v6005_v61 = vcombine.low %v5949_v32, %v5965_v4  ;;  %v6006_v9 = vcombine.high %v5949_v32, %v5965_v4  ;;  %v6021_v37 = vcombine.low %v5956_v56, %v5972_v29  ;;  %v6022_v62 = vcombine.high %v5956_v56, %v5972_v29 }
 0x879   : > { %2320 = vrot.lane.b32.xlu1 %v10632_v63, %s9124_s17  ;;  %v5869_v36 = vcombine.low %v5813_v55, %v5829_v39  ;;  %v5870_v53 = vcombine.high %v5813_v55, %v5829_v39  ;;  %v5885_v8 = vcombine.low %v5820_v60, %v5836_v0  ;;  %v5886_v41 = vcombine.high %v5820_v60, %v5836_v0 }
 0x87a   : > { %v6020_v40 = vrot.slane %v6006_v9, %v9483_v27  ;;  %v10110_v57 = vrot.slane %v6005_v61, %v9483_v27  ;;  %v6029_v34 = vrot.slane %v6021_v37, %v9483_v27  ;;  %v6036_v31 = vrot.slane %v6022_v62, %v9483_v27 }
 0x87b   : > { %v10633_v32 = vcombine.low %v9614_v49, %v9652_v25  ;;  %v10634_v56 = vcombine.high %v9614_v49, %v9652_v25  ;;  %v5884_v55 = vrot.slane %v5870_v53, %v9483_v27  ;;  %v10124_v60 = vrot.slane %v5869_v36, %v9483_v27 }
 0x87c   : > { %v5893_v16 = vrot.slane %v5885_v8, %v9483_v27  ;;  %v6039_v5 = vcombine.low %v10067_v12, %v6020_v40  ;;  %v6038_v4 = vcombine.high %v10070_v6, %v10110_v57  ;;  %v6041_v29 = vcombine.low %v10073_v30, %v6029_v34 }
 0x87d   : > { %2324 = vrot.lane.b32.xlu0 %v10633_v32, %s9122_s19  ;;  %2328 = vrot.lane.b32.xlu1 %v10634_v56, %s10587_s20  ;;  %v6040_v39 = vcombine.high %v10067_v12, %v6020_v40  ;;  %v6043_v0 = vcombine.low %v10080_v38, %v6036_v31  ;;  %v6042_v49 = vcombine.high %v10073_v30, %v6029_v34  ;;  %v10660_v32 = vld [vmem:[#allocation18_spill] sm:$0xff]  ;;  %v10663_v56 = vld [vmem:[#allocation17_spill] sm:$0xff] }
 0x87e   : > { %v6044_v25 = vcombine.high %v10080_v38, %v6036_v31  ;;  %v5903_v63 = vcombine.low %v10083_v35, %v5884_v55  ;;  %v5902_v61 = vcombine.high %v10090_v10, %v10124_v60  ;;  %v5905_v9 = vcombine.low %v10093_v46, %v5893_v16  ;;  %v10659_v31 = vld [vmem:[#allocation16_spill] sm:$0xff] }
 0x87f   : > { %v5904_v37 = vcombine.high %v10083_v35, %v5884_v55  ;;  %v5900_v62 = vrot.slane %v5886_v41, %v9483_v27  ;;  %v10635_v12 = vcombine.low %v9617_v50, %v9655_v26  ;;  %v10637_v30 = vcombine.high %v9617_v50, %v9655_v26  ;;  %v10664_v55 = vld [vmem:[#allocation19_spill] sm:$0xff] }
 0x880   : > { %v5906_v38 = vcombine.high %v10093_v46, %v5893_v16  ;;  %v6037_v35 = vcombine.low %v10070_v6, %v10110_v57  ;;  %v5901_v8 = vcombine.low %v10090_v10, %v10124_v60  ;;  %v10639_v41 = vcombine.low %v9620_v51, %v9658_v28 }
 0x881   : > { %2332 = vrot.lane.b32.xlu0 %v10635_v12, %s9121_s26  ;;  %2336 = vrot.lane.b32.xlu1 %v10637_v30, %s10636_s25  ;;  %v5907_v36 = vcombine.low %v10105_v14, %v5900_v62  ;;  %v5908_v53 = vcombine.high %v10105_v14, %v5900_v62  ;;  %v10641_v50 = vcombine.high %v9620_v51, %v9658_v28 }
 0x882   : > { %v10642_v26 = vcombine.high %v9599_v42, %v9637_v18  ;;  %v10643_v46 = vcombine.low %v9602_v43, %v9640_v19  ;;  %v10644_v14 = vcombine.high %v9602_v43, %v9640_v19  ;;  %v10645_v51 = vcombine.low %v9605_v44, %v9643_v20 }
 0x883   : > { %v10646_v28 = vcombine.high %v9605_v44, %v9643_v20  ;;  %v10647_v40 = vcombine.low %v9608_v45, %v9646_v22  ;;  %v10648_v43 = vcombine.high %v9608_v45, %v9646_v22  ;;  %v10649_v19 = vcombine.high %v9798_v1, %v9850_v52 }
 0x884   : > { %v10650_v44 = vcombine.low %v9801_v2, %v9853_v11  ;;  %v10651_v20 = vcombine.high %v9801_v2, %v9853_v11  ;;  %v10652_v45 = vcombine.low %v9804_v3, %v9856_v23  ;;  %v10653_v22 = vcombine.high %v9804_v3, %v9856_v23 }
 0x885   : > { %2340 = vrot.lane.b32.xlu0 %v10639_v41, %s10638_s2  ;;  %2344 = vrot.lane.b32.xlu1 %v10641_v50, %s10640_s14  ;;  %v10654_v34 = vcombine.low %v9807_v58, %v9859_v54  ;;  %v10655_v2 = vcombine.high %v9807_v58, %v9859_v54  ;;  %v10656_v11 = vcombine.high %v9822_v17, %v9836_v13 }
 0x886   : > { %v10657_v3 = vcombine.low %v9825_v59, %v9839_v15  ;;  %v10658_v23 = vcombine.high %v9825_v59, %v9839_v15  ;;  %v10661_v58 = vcombine.low %v10659_v31, %v10660_v32  ;;  %v10662_v54 = vcombine.high %v10659_v31, %v10660_v32  ;;  %v7809_v59 = vld [vmem:[%s10666_s16] sm:$0xff]  ;;  %s9030_s16 = sshll.u32 %s9125_s3, 4  ;;  %s9031_s16 = int_to_ptr.vmem [resolvable:$false] %s9030_s16 }
 0x887   : > { %v10665_v16 = vcombine.low %v10663_v56, %v10664_v55  ;;  %v10667_v15 = vcombine.high %v10663_v56, %v10664_v55  ;;  %v10671_v31 = vcombine.low %v9599_v42, %v9637_v18  ;;  %s9032_s23 = scalar_lea.vmem %s9031_s16, 512 }
 0x889   : > { %2348 = vrot.lane.b32.xlu0 %v10642_v26, %s9124_s17  ;;  %2352 = vrot.lane.b32.xlu1 %v10643_v46, %s9122_s19 }
 0x88d   : > { %2356 = vrot.lane.b32.xlu0 %v10644_v14, %s10587_s20  ;;  %2360 = vrot.lane.b32.xlu1 %v10645_v51, %s9121_s26 }
 0x891   : > { %2364 = vrot.lane.b32.xlu0 %v10646_v28, %s10636_s25  ;;  %2368 = vrot.lane.b32.xlu1 %v10647_v40, %s10638_s2 }
 0x895   : > { %2372 = vrot.lane.b32.xlu0 %v10648_v43, %s10640_s14  ;;  %4073 = vrot.lane.b32.xlu1 %v10649_v19, %s9124_s17 }
 0x899   : > { %4077 = vrot.lane.b32.xlu0 %v10650_v44, %s9122_s19  ;;  %4081 = vrot.lane.b32.xlu1 %v10651_v20, %s10587_s20 }
 0x89d   : > { %4085 = vrot.lane.b32.xlu0 %v10652_v45, %s9121_s26  ;;  %4089 = vrot.lane.b32.xlu1 %v10653_v22, %s10636_s25 }
 0x8a1   : > { %4093 = vrot.lane.b32.xlu0 %v10654_v34, %s10638_s2  ;;  %4097 = vrot.lane.b32.xlu1 %v10655_v2, %s10640_s14 }
 0x8a5   : > { %4101 = vrot.lane.b32.xlu0 %v10656_v11, %s9124_s17  ;;  %4105 = vrot.lane.b32.xlu1 %v10657_v3, %s9122_s19 }
 0x8a9   : > { %4109 = vrot.lane.b32.xlu0 %v10658_v23, %s10587_s20  ;;  %4113 = vrot.lane.b32.xlu1 %v10661_v58, %s9121_s26  ;;  %s10668_s20 = sld [smem:[#allocation31_spill]] }
 0x8ad   : > { %4117 = vrot.lane.b32.xlu0 %v10662_v54, %s10636_s25  ;;  %4121 = vrot.lane.b32.xlu1 %v10665_v16, %s10638_s2 }
 0x8af   : > { %v7817_v62 = vld [vmem:[%s10668_s20] sm:$0xff]  ;;  %s7828_s20 = scalar_lea.sflag [#allocation4], %s9440_s7 }
 0x8b1   : > { %4125 = vrot.lane.b32.xlu0 %v10667_v15, %s10640_s14  ;;  %7812 = vperm.xlu1 %8882, %v7809_v59  }
 0x8b5   : > { %7820 = vperm.xlu0 %8883, %v7817_v62   ;;  %6078 = vrot.lane.b32.xlu1 %v6039_v5, %s9122_s19 }
 0x8b9   : > { %6074 = vrot.lane.b32.xlu0 %v6038_v4, %s9124_s17  ;;  %6086 = vrot.lane.b32.xlu1 %v6041_v29, %s9121_s26 }
 0x8bd   : > { %6082 = vrot.lane.b32.xlu0 %v6040_v39, %s10669_s4  ;;  %6094 = vrot.lane.b32.xlu1 %v6043_v0, %s10638_s2 }
 0x8c1   : > { %6090 = vrot.lane.b32.xlu0 %v6042_v49, %s10636_s25  ;;  %6098 = vrot.lane.b32.xlu1 %v6044_v25, %s10640_s14 }
 0x8c5   : > { %6050 = vrot.lane.b32.xlu0 %v5903_v63, %s9122_s19  ;;  %6046 = vrot.lane.b32.xlu1 %v5902_v61, %s9124_s17  ;;  %v10670_v63 = vcombine.low %v9611_v48, %v9649_v24 }
 0x8c9   : > { %6058 = vrot.lane.b32.xlu0 %v5905_v9, %s9121_s26  ;;  %6054 = vrot.lane.b32.xlu1 %v5904_v37, %s10669_s4 }
 0x8cd   : > { %6066 = vrot.lane.b32.xlu0 %v5907_v36, %s10638_s2  ;;  %6062 = vrot.lane.b32.xlu1 %v5906_v38, %s10636_s25 }
 0x8d1   : > { %6070 = vrot.lane.b32.xlu0 %v5908_v53, %s10640_s14 }
 0x8e5   : > { %v6172_v5 = vpop.permute.xlu1 %6171  ;;  %v6169_v4 = vpop.permute.xlu0 %6168 }
 0x8e6   : > { %v6177_v29 = vcombine.low %v10055_v47, %v6172_v5  ;;  %v6178_v9 = vcombine.high %v10055_v47, %v6172_v5 }
 0x8e8   : > { %v6185_v37 = vrot.slane %v6177_v29, %v9481_v21  ;;  %v6192_v50 = vrot.slane %v6178_v9, %v9481_v21 }
 0x8e9   : > { %v6175_v39 = vpop.permute.xlu0 %6174 }
 0x8ea   : > { %v6193_v49 = vcombine.low %v6169_v4, %v6175_v39  ;;  %v6194_v25 = vcombine.high %v6169_v4, %v6175_v39 }
 0x8eb   : > { %v2321_v0 = vpop.permute.xlu1 %2320 }
 0x8ec   : > { %v2376_v61 = vsel %vm2375_vm5, %v10670_v63, %v2321_v0  ;;  %v6201_v12 = vrot.slane %v6193_v49, %v9481_v21  ;;  %v6208_v30 = vrot.slane %v6194_v25, %v9481_v21 }
 0x8ee   : > { %v6209_v53 = vcombine.low %v6185_v37, %v6201_v12  ;;  %v6210_v41 = vcombine.high %v6185_v37, %v6201_v12  ;;  %v6225_v26 = vcombine.low %v6192_v50, %v6208_v30  ;;  %v6226_v19 = vcombine.high %v6192_v50, %v6208_v30 }
 0x8ef   : > { %v2325_v38 = vpop.permute.xlu0 %2324  ;;  %v2329_v36 = vpop.permute.xlu1 %2328  ;;  %v10673_v50 = vcombine.low %v9822_v17, %v9836_v13 }
 0x8f0   : > { %v2378_v48 = vsel %vm2377_vm6, %v2376_v61, %v2325_v38  ;;  %v6217_v24 = vrot.slane %v6209_v53, %v9483_v27  ;;  %v6224_v47 = vrot.slane %v6210_v41, %v9483_v27  ;;  %v6233_v44 = vrot.slane %v6225_v26, %v9483_v27 }
 0x8f1   : > { %v2380_v46 = vsel %vm2379_vm7, %v2378_v48, %v2329_v36  ;;  %v6240_v11 = vrot.slane %v6226_v19, %v9483_v27 }
 0x8f2   : > { %8636 = vmatmul.mubr.msk.f32.vlgmr.msra.gmra.mrb[54].mxu0 %vm700_vm2, %v6217_v24  ;;  %8646 = vmatmul.mubr.msk.f32.vlgmr.msra.gmra.mrb[54].mxu1 %vm700_vm2, %v6224_v47  ;;  %v6241_v40 = vcombine.high %v6217_v24, %v10627_v33  ;;  %v6242_v2 = vcombine.high %v6224_v47, %v10627_v33  ;;  %v6243_v54 = vcombine.high %v6233_v44, %v10627_v33 }
 0x8f3   : > { %v2333_v14 = vpop.permute.xlu0 %2332  ;;  %v2337_v51 = vpop.permute.xlu1 %2336  ;;  %8639 = vmatpush3.msk.msra.mxu0 %vm830_vm3, %v10060_v7  ;;  %8640 = vmatprep.mubr.msk.f32.mxu0 %vm9108_vm0, %v10627_v33  ;;  %v6244_v16 = vcombine.high %v6240_v11, %v10627_v33 }
 0x8f4   : > { %v2382_v28 = vsel %vm2381_vm8, %v2380_v46, %v2333_v14  ;;  %8654 = vmatpush3.msk.msra.mxu1 %vm830_vm3, %v10060_v7  ;;  %8655 = vmatprep.mubr.msk.f32.mxu1 %vm9108_vm0, %v10627_v33 }
 0x8f5   : > { %v2384_v43 = vsel %vm2383_vm9, %v2382_v28, %v2337_v51  ;;  %8648 = vmatprep.subr.mxu0 %v10627_v33  ;;  %8663 = vmatprep.subr.mxu1 %v10627_v33 }
 0x8f6   : > { %8641 = vmatmul.mubr.msk.f32.vlgmr.msra.gmra.mrb[56].mxu0 %vm700_vm2, %v6241_v40  ;;  %8656 = vmatmul.mubr.msk.f32.vlgmr.msra.gmra.mrb[60].mxu1 %vm700_vm2, %v6233_v44 }
 0x8f7   : > { %v2341_v20 = vpop.permute.xlu0 %2340  ;;  %v2345_v45 = vpop.permute.xlu1 %2344  ;;  %8649 = vmatpush3.msk.msra.mxu0 %vm830_vm3, %v10060_v7  ;;  %8650 = vmatprep.mubr.msk.f32.mxu0 %vm9108_vm0, %v10627_v33 }
 0x8f8   : > { %v2386_v22 = vsel %vm2385_vm10, %v2384_v43, %v2341_v20  ;;  %8664 = vmatpush3.msk.msra.mxu1 %vm830_vm3, %v10060_v7  ;;  %8665 = vmatprep.mubr.msk.f32.mxu1 %vm9108_vm0, %v10627_v33 }
 0x8f9   : > { %v2388_v34 = vsel %vm2387_vm11, %v2386_v22, %v2345_v45  ;;  %8658 = vmatprep.subr.mxu0 %v10627_v33 }
 0x8fa   : > { %8651 = vmatmul.mubr.msk.f32.vlgmr.msra.gmra.mrb[58].mxu0 %vm700_vm2, %v6242_v2  ;;  %8666 = vmatmul.mubr.msk.f32.vlgmr.msra.gmra.mrb[62].mxu1 %vm700_vm2, %v6240_v11 }
 0x8fb   : > { %v2349_v3 = vpop.permute.xlu0 %2348  ;;  %v2353_v23 = vpop.permute.xlu1 %2352  ;;  %8659 = vmatpush3.msk.msra.mxu0 %vm830_vm3, %v10060_v7  ;;  %8660 = vmatprep.mubr.msk.f32.mxu0 %vm9108_vm0, %v10627_v33 }
 0x8fc   : > { %v2389_v32 = vsel %vm2375_vm5, %v10671_v31, %v2349_v3  ;;  %8668 = vmatprep.subr.mxu0 %v10627_v33 }
 0x8fd   : > { %v2390_v58 = vsel %vm2377_vm6, %v2389_v32, %v2353_v23 }
 0x8fe   : > { %8661 = vmatmul.mubr.msk.f32.vlgmr.msra.gmra.mrb[60].mxu0 %vm700_vm2, %v6243_v54 }
 0x8ff   : > { %v2357_v56 = vpop.permute.xlu0 %2356  ;;  %v2361_v42 = vpop.permute.xlu1 %2360  ;;  %8669 = vmatpush3.msk.msra.mxu0 %vm830_vm3, %v10060_v7  ;;  %8670 = vmatprep.mubr.msk.f32.mxu0 %vm9108_vm0, %v10627_v33  ;;  %v10672_v7 = vcombine.low %v9798_v1, %v9850_v52 }
 0x900   : > { %v2391_v18 = vsel %vm2379_vm7, %v2390_v58, %v2357_v56 }
 0x901   : > { %v2392_v55 = vsel %vm2381_vm8, %v2391_v18, %v2361_v42 }
 0x902   : > { %8671 = vmatmul.mubr.msk.f32.vlgmr.msra.gmra.mrb[62].mxu0 %vm700_vm2, %v6244_v16 }
 0x903   : > { %v2365_v59 = vpop.permute.xlu0 %2364  ;;  %v2369_v15 = vpop.permute.xlu1 %2368 }
 0x904   : > { %v2393_v62 = vsel %vm2383_vm9, %v2392_v55, %v2365_v59 }
 0x905   : > { %v2394_v5 = vsel %vm2385_vm10, %v2393_v62, %v2369_v15 }
 0x907   : > { %v2373_v4 = vpop.permute.xlu0 %2372  ;;  %v4074_v29 = vpop.permute.xlu1 %4073 }
 0x908   : > { %v2395_v39 = vsel %vm2387_vm11, %v2394_v5, %v2373_v4  ;;  %v4128_v0 = vsel %vm2375_vm5, %v10672_v7, %v4074_v29  ;;  %v6833_v5 = vld [vmem:[%s10674_s5] sm:$0xff] }
 0x909   : > { %8675 = vmatprep.mubr.msk.f32.mxu1 %vm700_vm2, %v6833_v5  ;;  %8680 = vmatprep.mubr.msk.f32.mxu0 %vm700_vm2, %v6833_v5 }
 0x90b   : > { %v4078_v49 = vpop.permute.xlu0 %4077  ;;  %v4082_v25 = vpop.permute.xlu1 %4081 }
 0x90c   : > { %v4129_v33 = vsel %vm2377_vm6, %v4128_v0, %v4078_v49 }
 0x90d   : > { %v4130_v63 = vsel %vm2379_vm7, %v4129_v33, %v4082_v25  ;;  %v6834_v25 = vld [vmem:[%s10674_s5 + $0x8] sm:$0xff] }
 0x90f   : > { %v4086_v61 = vpop.permute.xlu0 %4085  ;;  %v4090_v9 = vpop.permute.xlu1 %4089 }
 0x910   : > { %v4131_v37 = vsel %vm2381_vm8, %v4130_v63, %v4086_v61 }
 0x911   : > { %v4132_v12 = vsel %vm2383_vm9, %v4131_v37, %v4090_v9 }
 0x913   : > { %v4094_v30 = vpop.permute.xlu0 %4093  ;;  %v4098_v38 = vpop.permute.xlu1 %4097 }
 0x914   : > { %v4133_v36 = vsel %vm2385_vm10, %v4132_v12, %v4094_v30 }
 0x915   : > { %v4134_v1 = vsel %vm2387_vm11, %v4133_v36, %v4098_v38 }
 0x916   : > { %v4142_v52 = vadd.f32 %v4134_v1, %v2388_v34 }
 0x917   : > { %v4102_v53 = vpop.permute.xlu0 %4101  ;;  %v4106_v41 = vpop.permute.xlu1 %4105 }
 0x918   : > { %v4135_v48 = vsel %vm2375_vm5, %v10673_v50, %v4102_v53 }
 0x919   : > { %v4136_v24 = vsel %vm2377_vm6, %v4135_v48, %v4106_v41 }
 0x91b   : > { %v4110_v47 = vpop.permute.xlu0 %4109  ;;  %v4114_v26 = vpop.permute.xlu1 %4113 }
 0x91c   : > { %v4137_v46 = vsel %vm2379_vm7, %v4136_v24, %v4110_v47 }
 0x91d   : > { %v4138_v14 = vsel %vm2381_vm8, %v4137_v46, %v4114_v26 }
 0x91f   : > { %v4118_v51 = vpop.permute.xlu0 %4117  ;;  %v4122_v40 = vpop.permute.xlu1 %4121 }
 0x920   : > { %v4139_v28 = vsel %vm2383_vm9, %v4138_v14, %v4118_v51 }
 0x921   : > { %v4140_v43 = vsel %vm2385_vm10, %v4139_v28, %v4122_v40 }
 0x923   : > { %v4126_v19 = vpop.permute.xlu0 %4125 }
 0x924   : > { %v4141_v44 = vsel %vm2387_vm11, %v4140_v43, %v4126_v19 }
 0x925   : > { %v4143_v17 = vadd.f32 %v4141_v44, %v2395_v39 }
 0x930   : > { %v10358_v13 = vpop.permute.xlu1 %7812 }
 0x934   : > { %v10360_v20 = vpop.permute.xlu0 %7820  ;;  %v6079_v45 = vpop.permute.xlu1 %6078 }
 0x938   : > { %v6075_v22 = vpop.permute.xlu0 %6074  ;;  %v6087_v34 = vpop.permute.xlu1 %6086 }
 0x939   : > { %v6108_v2 = vsel %vm2375_vm5, %v6037_v35, %v6075_v22 }
 0x93a   : > { %v6109_v3 = vsel %vm2377_vm6, %v6108_v2, %v6079_v45 }
 0x93c   : > { %v6083_v11 = vpop.permute.xlu0 %6082  ;;  %v6095_v23 = vpop.permute.xlu1 %6094 }
 0x93d   : > { %v6110_v31 = vsel %vm2379_vm7, %v6109_v3, %v6083_v11 }
 0x93e   : > { %v6111_v58 = vsel %vm2381_vm8, %v6110_v31, %v6087_v34 }
 0x940   : > { %v6091_v32 = vpop.permute.xlu0 %6090  ;;  %v6099_v54 = vpop.permute.xlu1 %6098 }
 0x941   : > { %v6112_v56 = vsel %vm2383_vm9, %v6111_v58, %v6091_v32 }
 0x942   : > { %v6113_v42 = vsel %vm2385_vm10, %v6112_v56, %v6095_v23 }
 0x943   : > { %v6114_v18 = vsel %vm2387_vm11, %v6113_v42, %v6099_v54 }
 0x944   : > { %v10372_v55 = vadd.f32 %v6114_v18, %v4143_v17  ;;  %v6051_v6 = vpop.permute.xlu0 %6050  ;;  %v6047_v57 = vpop.permute.xlu1 %6046 }
 0x945   : > { %v6101_v35 = vsel %vm2375_vm5, %v5901_v8, %v6047_v57 }
 0x946   : > { %v6102_v59 = vsel %vm2377_vm6, %v6101_v35, %v6051_v6 }
 0x948   : > { %v6059_v16 = vpop.permute.xlu0 %6058  ;;  %v6055_v15 = vpop.permute.xlu1 %6054 }
 0x949   : > { %v6103_v62 = vsel %vm2379_vm7, %v6102_v59, %v6055_v15 }
 0x94a   : > { %v6104_v29 = vsel %vm2381_vm8, %v6103_v62, %v6059_v16 }
 0x94c   : > { %v6067_v4 = vpop.permute.xlu0 %6066  ;;  %v6063_v10 = vpop.permute.xlu1 %6062 }
 0x94d   : > { %v6105_v60 = vsel %vm2383_vm9, %v6104_v29, %v6063_v10 }
 0x94e   : > { %v6106_v39 = vsel %vm2385_vm10, %v6105_v60, %v6067_v4 }
 0x950   : > { %v6071_v8 = vpop.permute.xlu0 %6070 }
 0x951   : > { %v6107_v7 = vsel %vm2387_vm11, %v6106_v39, %v6071_v8 }
 0x952   : > { %v10389_v0 = vadd.f32 %v6107_v7, %v4142_v52 }
 0x9c5   : > { %v6318_v49 = vpop.f32.mrb[54].mxu0  ;;  %v6464_v33 = vpop.f32.mrb[54].mxu1 }
 0x9c6   : > { %v8637_v63 = vpop.f32.mrb[55].mxu0  ;;  %8673 = vmatprep.subr.msk.mxu1 %vm830_vm3, %v6318_v49  ;;  %v8647_v61 = vpop.f32.mrb[55].mxu1 }
 0x9c7   : > { %8674 = vmatpush3.msk.msra.mxu1 %vm830_vm3, %v6318_v49 }
 0x9c8   : > { %8676 = vmatmul.mubr.msk.f32.vlgmr.msra.gmra.mrb[64].mxu1 %vm700_vm2, %v6834_v25  ;;  %8683 = vmatprep.subr.msk.mxu1 %vm830_vm3, %v6464_v33 }
 0x9c9   : > { %v6391_v9 = vpop.f32.mrb[56].mxu0  ;;  %8684 = vmatpush3.msk.msra.mxu1 %vm830_vm3, %v6464_v33  ;;  %8685 = vmatprep.mubr.msk.f32.mxu1 %vm700_vm2, %v6833_v5  ;;  %v6610_v37 = vpop.f32.mrb[60].mxu1 }
 0x9ca   : > { %v8642_v12 = vpop.f32.mrb[57].mxu0  ;;  %8678 = vmatprep.subr.msk.mxu0 %vm830_vm3, %v6391_v9  ;;  %v8657_v30 = vpop.f32.mrb[61].mxu1  ;;  %8693 = vmatprep.subr.msk.mxu1 %vm830_vm3, %v6610_v37 }
 0x9cb   : > { %8679 = vmatpush3.msk.msra.mxu0 %vm830_vm3, %v6391_v9 }
 0x9cc   : > { %8681 = vmatmul.mubr.msk.f32.vlgmr.msra.gmra.mrb[64].mxu0 %vm700_vm2, %v6834_v25  ;;  %8686 = vmatmul.mubr.msk.f32.vlgmr.msra.gmra.mrb[66].mxu1 %vm700_vm2, %v6834_v25 }
 0x9cd   : > { %8694 = vmatpush3.msk.msra.mxu1 %vm830_vm3, %v6610_v37  ;;  %v6537_v38 = vpop.f32.mrb[58].mxu0  ;;  %8690 = vmatprep.mubr.msk.f32.mxu0 %vm700_vm2, %v6833_v5  ;;  %v6756_v36 = vpop.f32.mrb[62].mxu1 }
 0x9ce   : > { %v8652_v1 = vpop.f32.mrb[59].mxu0  ;;  %8688 = vmatprep.subr.msk.mxu0 %vm830_vm3, %v6537_v38  ;;  %8695 = vmatprep.mubr.msk.f32.mxu1 %vm700_vm2, %v6833_v5  ;;  %v8667_v52 = vpop.f32.mrb[63].mxu1 }
 0x9cf   : > { %8703 = vmatprep.subr.msk.mxu1 %vm830_vm3, %v6756_v36  ;;  %8689 = vmatpush3.msk.msra.mxu0 %vm830_vm3, %v6537_v38 }
 0x9d0   : > { %8691 = vmatmul.mubr.msk.f32.vlgmr.msra.gmra.mrb[66].mxu0 %vm700_vm2, %v6834_v25  ;;  %8696 = vmatmul.mubr.msk.f32.vlgmr.msra.gmra.mrb[68].mxu1 %vm700_vm2, %v6834_v25 }
 0x9d1   : > { %8704 = vmatpush3.msk.msra.mxu1 %vm830_vm3, %v6756_v36  ;;  %v6683_v53 = vpop.f32.mrb[60].mxu0  ;;  %8700 = vmatprep.mubr.msk.f32.mxu0 %vm700_vm2, %v6833_v5 }
 0x9d2   : > { %v8662_v41 = vpop.f32.mrb[61].mxu0  ;;  %8698 = vmatprep.subr.msk.mxu0 %vm830_vm3, %v6683_v53  ;;  %8705 = vmatprep.mubr.msk.f32.mxu1 %vm700_vm2, %v6833_v5 }
 0x9d3   : > { %8699 = vmatpush3.msk.msra.mxu0 %vm830_vm3, %v6683_v53 }
 0x9d4   : > { %8701 = vmatmul.mubr.msk.f32.vlgmr.msra.gmra.mrb[68].mxu0 %vm700_vm2, %v6834_v25  ;;  %8706 = vmatmul.mubr.msk.f32.vlgmr.msra.gmra.mrb[70].mxu1 %vm700_vm2, %v6834_v25 }
 0x9d5   : > { %v6829_v50 = vpop.f32.mrb[62].mxu0  ;;  %8710 = vmatprep.mubr.msk.f32.mxu0 %vm700_vm2, %v6833_v5 }
 0x9d6   : > { %v8672_v48 = vpop.f32.mrb[63].mxu0  ;;  %8708 = vmatprep.subr.msk.mxu0 %vm830_vm3, %v6829_v50 }
 0x9d7   : > { %8709 = vmatpush3.msk.msra.mxu0 %vm830_vm3, %v6829_v50 }
 0x9d8   : > { %8711 = vmatmul.mubr.msk.f32.vlgmr.msra.gmra.mrb[70].mxu0 %vm700_vm2, %v6834_v25 }
 0xa9b   : > { %v8677_v24 = vpop.f32.mrb[64].mxu1 }
 0xa9c   : > { %v6910_v47 = vpop.f32.mrb[65].mxu1 }
 0xa9f   : > { %v8682_v26 = vpop.f32.mrb[64].mxu0  ;;  %v8687_v46 = vpop.f32.mrb[66].mxu1 }
 0xaa0   : > { %v7601_v14 = vcombine.low %v8677_v24, %v8687_v46  ;;  %v7602_v51 = vcombine.high %v8677_v24, %v8687_v46  ;;  %v6988_v28 = vpop.f32.mrb[65].mxu0  ;;  %v7066_v40 = vpop.f32.mrb[67].mxu1 }
 0xaa1   : > { %v7465_v43 = vcombine.low %v6910_v47, %v7066_v40  ;;  %v7466_v19 = vcombine.high %v6910_v47, %v7066_v40 }
 0xaa2   : > { %v7609_v23 = vrot.slane %v7601_v14, %v9481_v21  ;;  %v7616_v31 = vrot.slane %v7602_v51, %v9481_v21 }
 0xaa3   : > { %v8692_v44 = vpop.f32.mrb[66].mxu0  ;;  %v8697_v17 = vpop.f32.mrb[68].mxu1  ;;  %v7473_v54 = vrot.slane %v7465_v43, %v9481_v21  ;;  %v7480_v56 = vrot.slane %v7466_v19, %v9481_v21 }
 0xaa4   : > { %v7617_v45 = vcombine.low %v8682_v26, %v8692_v44  ;;  %v7618_v22 = vcombine.high %v8682_v26, %v8692_v44  ;;  %v7144_v34 = vpop.f32.mrb[67].mxu0  ;;  %v7222_v2 = vpop.f32.mrb[69].mxu1 }
 0xaa5   : > { %v7481_v11 = vcombine.low %v6988_v28, %v7144_v34  ;;  %v7482_v3 = vcombine.high %v6988_v28, %v7144_v34 }
 0xaa6   : > { %v7625_v32 = vrot.slane %v7617_v45, %v9481_v21  ;;  %v7632_v58 = vrot.slane %v7618_v22, %v9481_v21 }
 0xaa7   : > { %v7489_v42 = vrot.slane %v7481_v11, %v9481_v21  ;;  %v7496_v18 = vrot.slane %v7482_v3, %v9481_v21  ;;  %v8702_v6 = vpop.f32.mrb[68].mxu0  ;;  %v8707_v57 = vpop.f32.mrb[70].mxu1 }
 0xaa8   : > { %v7665_v35 = vcombine.low %v7609_v23, %v7625_v32  ;;  %v7666_v16 = vcombine.high %v7609_v23, %v7625_v32  ;;  %v7681_v59 = vcombine.low %v7616_v31, %v7632_v58  ;;  %v7682_v15 = vcombine.high %v7616_v31, %v7632_v58  ;;  %v7300_v62 = vpop.f32.mrb[69].mxu0  ;;  %v7378_v5 = vpop.f32.mrb[71].mxu1 }
 0xaa9   : > { %v7529_v4 = vcombine.low %v7473_v54, %v7489_v42  ;;  %v7530_v29 = vcombine.high %v7473_v54, %v7489_v42  ;;  %v7545_v10 = vcombine.low %v7480_v56, %v7496_v18  ;;  %v7546_v60 = vcombine.high %v7480_v56, %v7496_v18 }
 0xaaa   : > { %v7633_v8 = vcombine.low %v8697_v17, %v8707_v57  ;;  %v7634_v39 = vcombine.high %v8697_v17, %v8707_v57  ;;  %v7497_v7 = vcombine.low %v7222_v2, %v7378_v5  ;;  %v7498_v49 = vcombine.high %v7222_v2, %v7378_v5 }
 0xaab   : > { %v8712_v25 = vpop.f32.mrb[70].mxu0  ;;  %v10433_v63 = vrot.slane %v7665_v35, %v9483_v27  ;;  %v7680_v61 = vrot.slane %v7666_v16, %v9483_v27  ;;  %v7689_v9 = vrot.slane %v7681_v59, %v9483_v27  ;;  %v7544_v37 = vrot.slane %v7530_v29, %v9483_v27 }
 0xaac   : > { %v7456_v33 = vpop.f32.mrb[71].mxu0  ;;  %v7649_v12 = vcombine.low %v8702_v6, %v8712_v25  ;;  %v7650_v30 = vcombine.high %v8702_v6, %v8712_v25  ;;  %v7641_v1 = vrot.slane %v7633_v8, %v9481_v21  ;;  %v7648_v52 = vrot.slane %v7634_v39, %v9481_v21 }
 0xaad   : > { %v7513_v38 = vcombine.low %v7300_v62, %v7456_v33  ;;  %v7514_v36 = vcombine.high %v7300_v62, %v7456_v33  ;;  %v7505_v53 = vrot.slane %v7497_v7, %v9481_v21  ;;  %v7512_v41 = vrot.slane %v7498_v49, %v9481_v21 }
 0xaae   : > { %v7657_v50 = vrot.slane %v7649_v12, %v9481_v21  ;;  %v7664_v48 = vrot.slane %v7650_v30, %v9481_v21  ;;  %v7553_v26 = vrot.slane %v7545_v10, %v9483_v27  ;;  %v7696_v46 = vrot.slane %v7682_v15, %v9483_v27 }
 0xaaf   : > { %v7521_v24 = vrot.slane %v7513_v38, %v9481_v21  ;;  %v7528_v47 = vrot.slane %v7514_v36, %v9481_v21  ;;  %v7537_v14 = vrot.slane %v7529_v4, %v9483_v27  ;;  %v7560_v51 = vrot.slane %v7546_v60, %v9483_v27 }
 0xab0   : > { %v7697_v28 = vcombine.low %v7641_v1, %v7657_v50  ;;  %v7698_v40 = vcombine.high %v7641_v1, %v7657_v50  ;;  %v7713_v43 = vcombine.low %v7648_v52, %v7664_v48  ;;  %v7714_v19 = vcombine.high %v7648_v52, %v7664_v48 }
 0xab1   : > { %v7561_v44 = vcombine.low %v7505_v53, %v7521_v24  ;;  %v7562_v17 = vcombine.high %v7505_v53, %v7521_v24  ;;  %v7577_v45 = vcombine.low %v7512_v41, %v7528_v47  ;;  %v7578_v22 = vcombine.high %v7512_v41, %v7528_v47 }
 0xab2   : > { %v7705_v34 = vrot.slane %v7697_v28, %v9483_v27  ;;  %v7712_v21 = vrot.slane %v7698_v40, %v9483_v27  ;;  %v7721_v2 = vrot.slane %v7713_v43, %v9483_v27  ;;  %v7728_v11 = vrot.slane %v7714_v19, %v9483_v27 }
 0xab3   : > { %v7576_v3 = vrot.slane %v7562_v17, %v9483_v27  ;;  %v7585_v23 = vrot.slane %v7577_v45, %v9483_v27  ;;  %v7569_v31 = vrot.slane %v7561_v44, %v9483_v27  ;;  %v7592_v32 = vrot.slane %v7578_v22, %v9483_v27 }
 0xab4   : > { %v7730_v58 = vcombine.high %v10433_v63, %v7705_v34  ;;  %v7731_v54 = vcombine.low %v7680_v61, %v7712_v21  ;;  %v7732_v56 = vcombine.high %v7680_v61, %v7712_v21  ;;  %v7733_v42 = vcombine.low %v7689_v9, %v7721_v2 }
 0xab5   : > { %v7595_v18 = vcombine.low %v7544_v37, %v7576_v3  ;;  %v7734_v6 = vcombine.high %v7689_v9, %v7721_v2  ;;  %v7597_v57 = vcombine.low %v7553_v26, %v7585_v23  ;;  %v7735_v35 = vcombine.low %v7696_v46, %v7728_v11 }
 0xab6   : > { %7766 = vrot.lane.b32.xlu0 %v7730_v58, %s9124_s17  ;;  %7770 = vrot.lane.b32.xlu1 %v7731_v54, %s9122_s19  ;;  %v7598_v16 = vcombine.high %v7553_v26, %v7585_v23  ;;  %v7594_v59 = vcombine.high %v7537_v14, %v7569_v31  ;;  %v7600_v15 = vcombine.high %v7560_v51, %v7592_v32 }
 0xab7   : > { %v7596_v62 = vcombine.high %v7544_v37, %v7576_v3  ;;  %v7599_v5 = vcombine.low %v7560_v51, %v7592_v32  ;;  %v7736_v4 = vcombine.high %v7696_v46, %v7728_v11  ;;  %v7729_v27 = vcombine.low %v10433_v63, %v7705_v34 }
 0xab8   : > { %v7593_v29 = vcombine.low %v7537_v14, %v7569_v31 }
 0xaba   : > { %7774 = vrot.lane.b32.xlu0 %v7732_v56, %s10669_s4  ;;  %7778 = vrot.lane.b32.xlu1 %v7733_v42, %s9121_s26 }
 0xabe   : > { %7742 = vrot.lane.b32.xlu0 %v7595_v18, %s9122_s19  ;;  %7782 = vrot.lane.b32.xlu1 %v7734_v6, %s10636_s25 }
 0xac2   : > { %7750 = vrot.lane.b32.xlu0 %v7597_v57, %s9121_s26  ;;  %7786 = vrot.lane.b32.xlu1 %v7735_v35, %s10638_s2  ;;  %s8152_s26 = sshll.u32 %s9242_s1, 8 }
 0xac6   : > { %7754 = vrot.lane.b32.xlu0 %v7598_v16, %s10636_s25  ;;  %7738 = vrot.lane.b32.xlu1 %v7594_v59, %s9124_s17 }
 0xaca   : > { %7762 = vrot.lane.b32.xlu0 %v7600_v15, %s10640_s14  ;;  %7746 = vrot.lane.b32.xlu1 %v7596_v62, %s10669_s4  ;;  %s8001_s4 = sshll.u32 %s9440_s7, 4 }
 0xacb   : > { %s681_s19 = scalar_lea.vmem [#allocation11], %s8001_s4 }
 0xacc   : > { %s7842_s17 = sshll.u32 %s681_s19, 4  ;;  %s10501_s17 = int_to_ptr.vmem [resolvable:$true] %s7842_s17 }
 0xacd   : > { %s9026_s1 = scalar_lea.vmem %s10501_s17, 256  ;;  %p9033_p3 = scmp.lt.s32.totalorder %s10501_s17, %s9031_s16 }
 0xace   : > { %7758 = vrot.lane.b32.xlu1 %v7599_v5, %s10638_s2  ;;  %p9027_p5 = scmp.ne.s32.totalorder %s10501_s17, %s9026_s1  ;;  %p9034_p13 = scmp.lt.s32.totalorder %s9032_s23, %s9026_s1 }
 0xad0   : > { %p9028_p9 = pnand %p9027_p5, %p10676_p7  ;;  %p9035_p0 = por %p9034_p13, %p9033_p3 }
 0xad2   : > { %7790 = vrot.lane.b32.xlu1 %v7736_v4, %s10640_s14  ;;  %s10675_s14 = sld [smem:[#allocation32_spill]]  ;;  %p9029_p12 = pneg %p9028_p9 }
 0xad4   : > { %p9036_p2 = pnand %p9035_p0, %p9029_p12 }
 0xad8   : > { %s10499_s13 = scalar_lea.hbm %s10675_s14, %s8152_s26 }
 0xb28   : > { %v7767_v10 = vpop.permute.xlu0 %7766  ;;  %v7771_v60 = vpop.permute.xlu1 %7770 }
 0xb29   : > { %v7800_v9 = vsel %vm2375_vm5, %v7729_v27, %v7767_v10 }
 0xb2a   : > { %v7801_v36 = vsel %vm2377_vm6, %v7800_v9, %v7771_v60 }
 0xb2c   : > { %v7775_v8 = vpop.permute.xlu0 %7774  ;;  %v7779_v39 = vpop.permute.xlu1 %7778 }
 0xb2d   : > { %v7802_v52 = vsel %vm2379_vm7, %v7801_v36, %v7775_v8 }
 0xb2e   : > { %v7803_v24 = vsel %vm2381_vm8, %v7802_v52, %v7779_v39 }
 0xb30   : > { %v7743_v7 = vpop.permute.xlu0 %7742  ;;  %v7783_v49 = vpop.permute.xlu1 %7782 }
 0xb31   : > { %v7804_v26 = vsel %vm2383_vm9, %v7803_v24, %v7783_v49 }
 0xb34   : > { %v7787_v25 = vpop.permute.xlu1 %7786  ;;  %v7751_v33 = vpop.permute.xlu0 %7750 }
 0xb35   : > { %v7805_v14 = vsel %vm2385_vm10, %v7804_v26, %v7787_v25 }
 0xb38   : > { %v7739_v63 = vpop.permute.xlu1 %7738  ;;  %v7755_v37 = vpop.permute.xlu0 %7754 }
 0xb39   : > { %v7793_v61 = vsel %vm2375_vm5, %v7593_v29, %v7739_v63 }
 0xb3a   : > { %v7794_v12 = vsel %vm2377_vm6, %v7793_v61, %v7743_v7 }
 0xb3c   : > { %v7747_v30 = vpop.permute.xlu1 %7746  ;;  %v7763_v50 = vpop.permute.xlu0 %7762 }
 0xb3d   : > { %v7795_v38 = vsel %vm2379_vm7, %v7794_v12, %v7747_v30 }
 0xb3e   : > { %v7796_v1 = vsel %vm2381_vm8, %v7795_v38, %v7751_v33 }
 0xb3f   : > { %v7797_v53 = vsel %vm2383_vm9, %v7796_v1, %v7755_v37 }
 0xb40   : > { %v7759_v41 = vpop.permute.xlu1 %7758 }
 0xb41   : > { %v7798_v48 = vsel %vm2385_vm10, %v7797_v53, %v7759_v41 }
 0xb42   : > { %v7799_v47 = vsel %vm2387_vm11, %v7798_v48, %v7763_v50 }
 0xb43   : > { %v7807_v46 = vadd.f32 %v7799_v47, %v10389_v0 }
 0xb44   : > { %v7791_v51 = vpop.permute.xlu1 %7790 }
 0xb45   : > { %v7815_v28 = vmul.f32 %v10358_v13, %v7807_v46  ;;  %v7806_v40 = vsel %vm2387_vm11, %v7805_v14, %v7791_v51 }
 0xb46   : > { %v7808_v43 = vadd.f32 %v7806_v40, %v10372_v55 }
 0xb47   : > { %v7823_v19 = vadd.f32 %v10360_v20, %v7815_v28 }
 0xb48   : > { %v7816_v44 = vmul.f32 %v10358_v13, %v7808_v43 }
 0xb49   : > { %7825 = vst [vmem:[%s681_s19] sm:$0xff] %v7823_v19 }
 0xb4a   : > { %v7824_v0 = vadd.f32 %v10360_v20, %v7816_v44 }
 0xb4c   : > { %7826 = vst [vmem:[%s681_s19 + $0x8] sm:$0xff] %v7824_v0 }
 0xb4d   : > { %9039 = shalt.err (!%p9036_p2)
}
 0xb4e   : > { %s9040_s7 = scalar_lea.hbm %s10499_s13, 256  ;;  %s9044_s19 = scalar_lea.hbm %s10675_s14, 512 }
 0xb4f   : > { %p9041_p8 = scmp.ne.s32.totalorder %s10499_s13, %s9040_s7  ;;  %p9045_p11 = scmp.lt.u32.totalorder %s10499_s13, %s10675_s14 }
 0xb50   : > { %p9046_p1 = scmp.lt.u32.totalorder %s9044_s19, %s9040_s7  ;;  %p9048_p5 = scmp.lt.u32.totalorder %s9040_s7, %s10499_s13 }
 0xb51   : > { %p9042_p10 = pnand %p9041_p8, %p10676_p7 }
 0xb52   : > { %p9047_p6 = por %p9046_p1, %p9045_p11 }
 0xb53   : > { %p9043_p4 = pneg %p9042_p10 }
 0xb54   : > { %p9049_p9 = por %p9048_p5, %p9047_p6 }
 0xb56   : > { %p9050_p12 = pnand %p9049_p9, %p9043_p4 }
 0xb58   : > { %9053 = shalt.err (!%p9050_p12)
}
 0xb59   : > { %8795 = dma.vmem_to_hbm [thread:$0]  (%p10676_p7), %s10501_s17, 256, %s10499_s13, %s7828_s20  }
 0xb5a PF: > { %s7854_s1 = sand.u32 1, %s9088_s27   ;;  %p10677_p3 = scmp.ne.s32.totalorder %s10612_s0, 0 }
 0xb5b   : > { %p10678_p13 = scmp.ge.s32.totalorder %s9100_s30, 2  ;;  %s7855_s3 = scalar_lea.sflag [#allocation4], %s7854_s1 }
 0xb5d   : > { %p8815_p0 = pnand %p10678_p13, %p10677_p3 }
 0xb5f   : > { %9083 = dma.done.wait (!%p8815_p0), %s7855_s3, 256  }
 0xb60   : > { %9085 = vsyncadd (!%p8815_p0), %s7855_s3, 4294967040  ;;  %p33_p2 = scmp.ge.s32.totalorder %s9364_s24, 4   ;;  %s10679_s27 = smov %s9092_s28 }
 0xb61   : > { %s10680_s28 = smov %s9096_s29  ;;  %s10681_s29 = smov %s9375_s15 }
 0xb62   : > { %s10682_s30 = smov %s9364_s24  ;;  %35 = sbr.rel (!%p33_p2) target bundleno = 21 (0x15), region = 162 }
 0xb69   :  { %7860 = vsyncpa [#allocation3], 1 }
 0xb6a   :  { %7862 = vsyncpa [#allocation3 + $0x1], 1 }
 0xb6b   :  { %7863 = vsyncpa [#allocation6], 1 }
 0xb6c   :  { %7864 = vsyncpa [#allocation9], 1 }
 0xb6d   :  { %7865 = vsyncpa [#allocation4], 1 }
 0xb6e   :  { %7867 = vsyncpa [#allocation4 + $0x1], 1 }

</bundles_post_ra>
